<compile_context>
chip_gen: v5e
topology: v5e:2x2
jax: 0.10.0
libtpu: 0.0.40
codegen_flags: <defaults>
</compile_context>

<pallas_src>
import jax
import jax.numpy as jnp
from jax.experimental import pallas as pl
from jax.experimental.pallas import tpu as pltpu

NEG_SLOPE = 0.01  # PyTorch nn.LeakyReLU default negative_slope


def _round_up(x, m):
    return ((x + m - 1) // m) * m


def _mlp_kernel(x_ref, w1_ref, b1_ref, w2_ref, b2_ref, w3_ref, b3_ref,
                w4_ref, b4_ref, o_ref):
    # x tile arrives in natural (TILE_B, in_size) f32 layout; cast once in-kernel.
    x = x_ref[...].astype(w1_ref.dtype)                                  # (TB, in)

    # layer1: Linear(in, 128) + ReLU
    h = jnp.dot(x, w1_ref[...], preferred_element_type=jnp.float32)      # (TB, 128) f32
    h = jnp.maximum(h + b1_ref[...], 0.0)

    # layer2: Linear(128, 64) + LeakyReLU(0.01)
    h = jnp.dot(h.astype(w2_ref.dtype), w2_ref[...],
                preferred_element_type=jnp.float32)                      # (TB, 64)
    h = h + b2_ref[...]
    h = jnp.maximum(h, NEG_SLOPE * h)

    # layer3: Linear(64, 32) + LeakyReLU(0.01)
    h = jnp.dot(h.astype(w3_ref.dtype), w3_ref[...],
                preferred_element_type=jnp.float32)                      # (TB, 32)
    h = h + b3_ref[...]
    h = jnp.maximum(h, NEG_SLOPE * h)

    # layer4: Linear(32, 1) -> VPU multiply + lane reduce (skip N=1 MXU matmul)
    y = jnp.sum(h * w4_ref[...], axis=-1, keepdims=True) + b4_ref[...]   # (TB, 1) f32
    o_ref[...] = y.astype(o_ref.dtype)


def _vmem_budget_bytes(tile_b, in_size):
    # x double-buffer window (f32) + f32/bf16 activation temps + resident weights,
    # with 2x headroom, clamped to [32 MiB, 48 MiB] (valid on v5e/v6e/v7x).
    x_window = 2 * tile_b * in_size * 4
    acts = tile_b * ((in_size + 128 + 64) * 2 + (128 + 64 + 32 + 1) * 4)
    weights = 2 * (in_size * 128 + 128 * 64 + 64 * 32) * 2 + 4096
    out_window = 2 * tile_b * 4
    est = x_window + acts + weights + out_window
    return int(min(max(2 * est, 32 << 20), 48 << 20))


def regression_nn_forward(x, params, *, tile_b=8192, compute_dtype=jnp.bfloat16):
    """x: (B, input_size) f32, params in PyTorch layout -> (B, 1) f32."""
    w1, b1, w2, b2, w3, b3, w4, b4 = params
    B, in_size = x.shape

    # Clamp the batch tile for small batches (bounded padding); keep it a
    # multiple of 8 sublanes (512 keeps lane-sized granularity too).
    tile_b = max(8, min(tile_b, _round_up(B, 512)))
    nb = pl.cdiv(B, tile_b)
    # v7x has 2 TensorCores: prefer >=2 grid steps on the "parallel" axis.
    if nb == 1 and B > 512:
        tile_b = _round_up(pl.cdiv(B, 2), 512)
        nb = pl.cdiv(B, tile_b)
    Bp = nb * tile_b
    if Bp != B:
        x = jnp.pad(x, ((0, Bp - B), (0, 0)))

    # Weights pre-transposed to (in, out); MXU operands in compute_dtype with
    # f32 accumulation.  Biases / last-layer weight stay f32 (VPU side).
    w1t = w1.T.astype(compute_dtype)                     # (in, 128)
    w2t = w2.T.astype(compute_dtype)                     # (128, 64)
    w3t = w3.T.astype(compute_dtype)                     # (64, 32)
    w4r = w4.reshape(1, 32).astype(jnp.float32)          # (1, 32) element-wise use
    b1r = b1.reshape(1, -1).astype(jnp.float32)          # (1, 128)
    b2r = b2.reshape(1, -1).astype(jnp.float32)          # (1, 64)
    b3r = b3.reshape(1, -1).astype(jnp.float32)          # (1, 32)
    b4r = b4.reshape(1, 1).astype(jnp.float32)           # (1, 1)

    def resident(arr):
        # Whole array, constant block index -> fetched once, stays VMEM-resident.
        return pl.BlockSpec(arr.shape, lambda i: (0, 0))

    out = pl.pallas_call(
        _mlp_kernel,
        out_shape=jax.ShapeDtypeStruct((Bp, 1), jnp.float32),
        grid=(nb,),
        in_specs=[
            pl.BlockSpec((tile_b, in_size), lambda i: (i, 0)),  # streamed, double-buffered
            resident(w1t), resident(b1r),
            resident(w2t), resident(b2r),
            resident(w3t), resident(b3r),
            resident(w4r), resident(b4r),
        ],
        out_specs=pl.BlockSpec((tile_b, 1), lambda i: (i, 0)),
        compiler_params=pltpu.CompilerParams(
            dimension_semantics=("parallel",),
            vmem_limit_bytes=_vmem_budget_bytes(tile_b, in_size),
        ),
    )(x, w1t, b1r, w2t, b2r, w3t, b3r, w4r, b4r)

    return out[:B]


def init_params(key, input_size):
    """PyTorch-layout params: W_i is (out, in), b_i is (out,); uniform +/- 1/sqrt(fan_in)."""
    dims = [(input_size, 128), (128, 64), (64, 32), (32, 1)]
    params = []
    for fan_in, fan_out in dims:
        key, kw, kb = jax.random.split(key, 3)
        bound = 1.0 / (fan_in ** 0.5)
        w = jax.random.uniform(kw, (fan_out, fan_in), jnp.float32, -bound, bound)
        b = jax.random.uniform(kb, (fan_out,), jnp.float32, -bound, bound)
        params.extend([w, b])
    return tuple(params)


def reference_forward(x, params):
    """Pure f32 reference matching the PyTorch module semantics."""
    w1, b1, w2, b2, w3, b3, w4, b4 = params
    h = jnp.maximum(x @ w1.T + b1, 0.0)
    h = h @ w2.T + b2
    h = jnp.where(h > 0.0, h, NEG_SLOPE * h)
    h = h @ w3.T + b3
    h = jnp.where(h > 0.0, h, NEG_SLOPE * h)
    return h @ w4.T + b4


if __name__ == "__main__":
    key = jax.random.PRNGKey(0)
    key, kx = jax.random.split(key)
    batch, input_size = 8, 16
    x = jax.random.normal(kx, (batch, input_size), jnp.float32)
    params = init_params(key, input_size)

    out = regression_nn_forward(x, params)
    out = jax.block_until_ready(out)

    ref = reference_forward(x, params)
    assert out.shape == (batch, 1), out.shape
    # bf16 matmul operands with f32 accumulation -> loosened tolerance
    # (use compute_dtype=jnp.float32 in the wrapper for ~1e-5 agreement).
    assert jnp.allclose(out, ref, atol=2e-2, rtol=2e-2), "mismatch vs reference"
    print("KERNEL_OK")
</pallas_src>

<mosaic_0001>
module attributes {stable_mosaic.version = 11 : i64} {
  func.func @_mlp_kernel(%arg0: i32, %arg1: memref<512x16xf32, #tpu.memory_space<vmem>>, %arg2: memref<16x128xbf16, #tpu.memory_space<vmem>>, %arg3: memref<1x128xf32, #tpu.memory_space<vmem>>, %arg4: memref<128x64xbf16, #tpu.memory_space<vmem>>, %arg5: memref<1x64xf32, #tpu.memory_space<vmem>>, %arg6: memref<64x32xbf16, #tpu.memory_space<vmem>>, %arg7: memref<1x32xf32, #tpu.memory_space<vmem>>, %arg8: memref<1x32xf32, #tpu.memory_space<vmem>>, %arg9: memref<1x1xf32, #tpu.memory_space<vmem>>, %arg10: memref<512x1xf32, #tpu.memory_space<vmem>>) attributes {dimension_semantics = [#tpu.dimension_semantics<parallel>], iteration_bounds = array<i64: 1>, scalar_prefetch = 0 : i64, scratch_operands = 0 : i64, tpu.core_type = #tpu.core_type<tc>, window_params = [{transform_indices = @transform_0, window_bounds = array<i64: 512, 16>}, {pipeline_mode = #tpu.pipeline_mode<synchronous>, transform_indices = @transform_1, window_bounds = array<i64: 16, 128>}, {pipeline_mode = #tpu.pipeline_mode<synchronous>, transform_indices = @transform_2, window_bounds = array<i64: 1, 128>}, {pipeline_mode = #tpu.pipeline_mode<synchronous>, transform_indices = @transform_3, window_bounds = array<i64: 128, 64>}, {pipeline_mode = #tpu.pipeline_mode<synchronous>, transform_indices = @transform_4, window_bounds = array<i64: 1, 64>}, {pipeline_mode = #tpu.pipeline_mode<synchronous>, transform_indices = @transform_5, window_bounds = array<i64: 64, 32>}, {pipeline_mode = #tpu.pipeline_mode<synchronous>, transform_indices = @transform_6, window_bounds = array<i64: 1, 32>}, {pipeline_mode = #tpu.pipeline_mode<synchronous>, transform_indices = @transform_7, window_bounds = array<i64: 1, 32>}, {pipeline_mode = #tpu.pipeline_mode<synchronous>, transform_indices = @transform_8, window_bounds = array<i64: 1, 1>}, {transform_indices = @transform_9, window_bounds = array<i64: 512, 1>}]} {
    %c0 = arith.constant 0 : index
    %c0_0 = arith.constant 0 : index
    %0 = vector.load %arg1[%c0, %c0_0] : memref<512x16xf32, #tpu.memory_space<vmem>>, vector<512x16xf32>
    %1 = arith.truncf %0 : vector<512x16xf32> to vector<512x16xbf16>
    %c0_1 = arith.constant 0 : index
    %c0_2 = arith.constant 0 : index
    %2 = vector.load %arg2[%c0_1, %c0_2] : memref<16x128xbf16, #tpu.memory_space<vmem>>, vector<16x128xbf16>
    %cst = arith.constant dense<0.000000e+00> : vector<512x128xf32>
    %3 = tpu.matmul %1, %2, %cst {dimension_numbers = #tpu.dot_dimension_numbers<[1], [0], [0], [1], [0, 0, 1, 1], [], []>} : vector<512x16xbf16>, vector<16x128xbf16>, vector<512x128xf32> -> vector<512x128xf32>
    %c0_3 = arith.constant 0 : index
    %c0_4 = arith.constant 0 : index
    %4 = vector.load %arg3[%c0_3, %c0_4] : memref<1x128xf32, #tpu.memory_space<vmem>>, vector<1x128xf32>
    %5 = vector.broadcast %4 : vector<1x128xf32> to vector<512x128xf32>
    %6 = arith.addf %3, %5 : vector<512x128xf32>
    %cst_5 = arith.constant 0.000000e+00 : f32
    %7 = vector.broadcast %cst_5 : f32 to vector<512x128xf32>
    %8 = arith.maximumf %6, %7 : vector<512x128xf32>
    %9 = arith.truncf %8 : vector<512x128xf32> to vector<512x128xbf16>
    %c0_6 = arith.constant 0 : index
    %c0_7 = arith.constant 0 : index
    %10 = vector.load %arg4[%c0_6, %c0_7] : memref<128x64xbf16, #tpu.memory_space<vmem>>, vector<128x64xbf16>
    %cst_8 = arith.constant dense<0.000000e+00> : vector<512x64xf32>
    %11 = tpu.matmul %9, %10, %cst_8 {dimension_numbers = #tpu.dot_dimension_numbers<[1], [0], [0], [1], [0, 0, 1, 1], [], []>} : vector<512x128xbf16>, vector<128x64xbf16>, vector<512x64xf32> -> vector<512x64xf32>
    %c0_9 = arith.constant 0 : index
    %c0_10 = arith.constant 0 : index
    %12 = vector.load %arg5[%c0_9, %c0_10] : memref<1x64xf32, #tpu.memory_space<vmem>>, vector<1x64xf32>
    %13 = vector.broadcast %12 : vector<1x64xf32> to vector<512x64xf32>
    %14 = arith.addf %11, %13 : vector<512x64xf32>
    %cst_11 = arith.constant 0.00999999977 : f32
    %15 = vector.broadcast %cst_11 : f32 to vector<512x64xf32>
    %16 = arith.mulf %15, %14 : vector<512x64xf32>
    %17 = arith.maximumf %14, %16 : vector<512x64xf32>
    %18 = arith.truncf %17 : vector<512x64xf32> to vector<512x64xbf16>
    %c0_12 = arith.constant 0 : index
    %c0_13 = arith.constant 0 : index
    %19 = vector.load %arg6[%c0_12, %c0_13] : memref<64x32xbf16, #tpu.memory_space<vmem>>, vector<64x32xbf16>
    %cst_14 = arith.constant dense<0.000000e+00> : vector<512x32xf32>
    %20 = tpu.matmul %18, %19, %cst_14 {dimension_numbers = #tpu.dot_dimension_numbers<[1], [0], [0], [1], [0, 0, 1, 1], [], []>} : vector<512x64xbf16>, vector<64x32xbf16>, vector<512x32xf32> -> vector<512x32xf32>
    %c0_15 = arith.constant 0 : index
    %c0_16 = arith.constant 0 : index
    %21 = vector.load %arg7[%c0_15, %c0_16] : memref<1x32xf32, #tpu.memory_space<vmem>>, vector<1x32xf32>
    %22 = vector.broadcast %21 : vector<1x32xf32> to vector<512x32xf32>
    %23 = arith.addf %20, %22 : vector<512x32xf32>
    %cst_17 = arith.constant 0.00999999977 : f32
    %24 = vector.broadcast %cst_17 : f32 to vector<512x32xf32>
    %25 = arith.mulf %24, %23 : vector<512x32xf32>
    %26 = arith.maximumf %23, %25 : vector<512x32xf32>
    %c0_18 = arith.constant 0 : index
    %c0_19 = arith.constant 0 : index
    %27 = vector.load %arg8[%c0_18, %c0_19] : memref<1x32xf32, #tpu.memory_space<vmem>>, vector<1x32xf32>
    %28 = vector.broadcast %27 : vector<1x32xf32> to vector<512x32xf32>
    %29 = arith.mulf %26, %28 : vector<512x32xf32>
    %cst_20 = arith.constant dense<0.000000e+00> : vector<512xf32>
    %30 = vector.multi_reduction <add>, %29, %cst_20 [1] : vector<512x32xf32> to vector<512xf32>
    %31 = vector.shape_cast %30 : vector<512xf32> to vector<512x1xf32>
    %c0_21 = arith.constant 0 : index
    %c0_22 = arith.constant 0 : index
    %32 = vector.load %arg9[%c0_21, %c0_22] : memref<1x1xf32, #tpu.memory_space<vmem>>, vector<1x1xf32>
    %33 = vector.broadcast %32 : vector<1x1xf32> to vector<512x1xf32>
    %34 = arith.addf %31, %33 : vector<512x1xf32>
    %c0_23 = arith.constant 0 : index
    %c0_24 = arith.constant 0 : index
    %35 = vector.load %arg10[%c0_23, %c0_24] : memref<512x1xf32, #tpu.memory_space<vmem>>, vector<512x1xf32>
    tpu.vector_store %arg10[%c0_23, %c0_24], %34 {strides = array<i32>} : memref<512x1xf32, #tpu.memory_space<vmem>>, vector<512x1xf32>,
    return
  }
  func.func @transform_0(%arg0: i32) -> (i32, i32) {
    %c0_i32 = arith.constant 0 : i32
    %c0_i32_0 = arith.constant 0 : i32
    return %arg0, %c0_i32 : i32, i32
  }
  func.func @transform_1(%arg0: i32) -> (i32, i32) {
    %c0_i32 = arith.constant 0 : i32
    %c0_i32_0 = arith.constant 0 : i32
    %c0_i32_1 = arith.constant 0 : i32
    return %c0_i32, %c0_i32_0 : i32, i32
  }
  func.func @transform_2(%arg0: i32) -> (i32, i32) {
    %c0_i32 = arith.constant 0 : i32
    %c0_i32_0 = arith.constant 0 : i32
    %c0_i32_1 = arith.constant 0 : i32
    return %c0_i32, %c0_i32_0 : i32, i32
  }
  func.func @transform_3(%arg0: i32) -> (i32, i32) {
    %c0_i32 = arith.constant 0 : i32
    %c0_i32_0 = arith.constant 0 : i32
    %c0_i32_1 = arith.constant 0 : i32
    return %c0_i32, %c0_i32_0 : i32, i32
  }
  func.func @transform_4(%arg0: i32) -> (i32, i32) {
    %c0_i32 = arith.constant 0 : i32
    %c0_i32_0 = arith.constant 0 : i32
    %c0_i32_1 = arith.constant 0 : i32
    return %c0_i32, %c0_i32_0 : i32, i32
  }
  func.func @transform_5(%arg0: i32) -> (i32, i32) {
    %c0_i32 = arith.constant 0 : i32
    %c0_i32_0 = arith.constant 0 : i32
    %c0_i32_1 = arith.constant 0 : i32
    return %c0_i32, %c0_i32_0 : i32, i32
  }
  func.func @transform_6(%arg0: i32) -> (i32, i32) {
    %c0_i32 = arith.constant 0 : i32
    %c0_i32_0 = arith.constant 0 : i32
    %c0_i32_1 = arith.constant 0 : i32
    return %c0_i32, %c0_i32_0 : i32, i32
  }
  func.func @transform_7(%arg0: i32) -> (i32, i32) {
    %c0_i32 = arith.constant 0 : i32
    %c0_i32_0 = arith.constant 0 : i32
    %c0_i32_1 = arith.constant 0 : i32
    return %c0_i32, %c0_i32_0 : i32, i32
  }
  func.func @transform_8(%arg0: i32) -> (i32, i32) {
    %c0_i32 = arith.constant 0 : i32
    %c0_i32_0 = arith.constant 0 : i32
    %c0_i32_1 = arith.constant 0 : i32
    return %c0_i32, %c0_i32_0 : i32, i32
  }
  func.func @transform_9(%arg0: i32) -> (i32, i32) {
    %c0_i32 = arith.constant 0 : i32
    %c0_i32_0 = arith.constant 0 : i32
    return %arg0, %c0_i32 : i32, i32
  }
}

</mosaic_0001>

<bundles_post_ra>
// kernel: tpu_custom_call.1
= control target key start
LH: loop header
LB: loop body
LE: loop exit
PB: predicated region body
PF: predicated region fallthrough
CT: control target
= control target key end

     0   :  { %vm143_vm0 = vcmask 130048   ;;  %vm938_vm1 = vcmask 523264   ;;  %vm1400_vm2 = vcmask 261120   ;;  %vm1661_vm3 = vcmask 7168   ;;  %s2939_s1 = inlined_call_operand.vmem [shape: bf16[16,128], index: 1, kind: input, shape index: {}]   ;;  %s2940_s0 = inlined_call_operand.vmem [shape: f32[512,16], index: 0, kind: input, shape index: {}]   ;;  %s2941_s2 = inlined_call_operand.vmem [shape: f32[1,128], index: 2, kind: input, shape index: {}]   ;;  %s2942_s3 = inlined_call_operand.vmem [shape: bf16[128,64], index: 3, kind: input, shape index: {}]   ;;  %s2943_s4 = inlined_call_operand.vmem [shape: f32[1,64], index: 4, kind: input, shape index: {}]   ;;  %s2944_s5 = inlined_call_operand.vmem [shape: bf16[64,32], index: 5, kind: input, shape index: {}]   ;;  %s2945_s6 = inlined_call_operand.vmem [shape: f32[1,32], index: 6, kind: input, shape index: {}]   ;;  %s2946_s7 = inlined_call_operand.vmem [shape: f32[1,32], index: 7, kind: input, shape index: {}]   ;;  %s2947_s8 = inlined_call_operand.<no memory space> [shape: f32[1,1], index: 8, kind: input, shape index: {}]   ;;  %s2948_s9 = inlined_call_operand.vmem [shape: f32[512,1], index: 9, kind: output, shape index: {}]  }
   0x1   :  { %v1846_v0 = vld [vmem:[%s2939_s1] sm:$0xff]  ;;  %v36_v2 = vld [vmem:[%s2940_s0 + $0x8] sm:$0xff]  ;;  %v37_v4 = vld [vmem:[%s2940_s0 + $0x10] sm:$0xff] }
   0x2   :  { %v35_v1 = vld [vmem:[%s2940_s0] sm:$0xff]  ;;  %247 = vmatpush.bf16.msra.mxu0 %v1846_v0  ;;  %1859 = vmatpush.bf16.msra.mxu3 %v1846_v0  ;;  %v38_v5 = vld [vmem:[%s2940_s0 + $0x18] sm:$0xff]  ;;  %v40_v8 = vld [vmem:[%s2940_s0 + $0x28] sm:$0xff] }
   0x3   :  { %v99_v3 = vpack.c.bf16 %v36_v2, %v35_v1  ;;  %v100_v6 = vpack.c.bf16 %v38_v5, %v37_v4  ;;  %v39_v7 = vld [vmem:[%s2940_s0 + $0x20] sm:$0xff]  ;;  %v41_v10 = vld [vmem:[%s2940_s0 + $0x30] sm:$0xff]  ;;  %v42_v11 = vld [vmem:[%s2940_s0 + $0x38] sm:$0xff] }
   0x4   :  { %v101_v9 = vpack.c.bf16 %v40_v8, %v39_v7  ;;  %v102_v12 = vpack.c.bf16 %v42_v11, %v41_v10  ;;  %v43_v13 = vld [vmem:[%s2940_s0 + $0x40] sm:$0xff]  ;;  %v44_v14 = vld [vmem:[%s2940_s0 + $0x48] sm:$0xff]  ;;  %v1854_v16 = vld [vmem:[%s2942_s3 + $0x38] sm:$0xff] }
   0x5   :  { %1734 = vmatmul.msk.bf16.vlgmr.msra.gmra.mxu0 %vm143_vm0, %v99_v3  ;;  %v103_v15 = vpack.c.bf16 %v44_v14, %v43_v13  ;;  %573 = vmatpush.bf16.msra.mxu1 %v1854_v16  ;;  %v45_v17 = vld [vmem:[%s2940_s0 + $0x50] sm:$0xff]  ;;  %v46_v18 = vld [vmem:[%s2940_s0 + $0x58] sm:$0xff]  ;;  %v1852_v21 = vld [vmem:[%s2942_s3 + $0x28] sm:$0xff] }
   0x6   :  { %1860 = vmatpush.bf16.msrb.mxu3 %v1854_v16  ;;  %v104_v19 = vpack.c.bf16 %v46_v18, %v45_v17  ;;  %v1853_v20 = vld [vmem:[%s2942_s3 + $0x30] sm:$0xff]  ;;  %v1851_v22 = vld [vmem:[%s2942_s3 + $0x20] sm:$0xff]  ;;  %v48_v24 = vld [vmem:[%s2940_s0 + $0x68] sm:$0xff] }
   0x7   :  { %v47_v23 = vld [vmem:[%s2940_s0 + $0x60] sm:$0xff]  ;;  %v1850_v25 = vld [vmem:[%s2942_s3 + $0x18] sm:$0xff]  ;;  %v1849_v27 = vld [vmem:[%s2942_s3 + $0x10] sm:$0xff] }
   0x8   :  { %v105_v26 = vpack.c.bf16 %v48_v24, %v47_v23  ;;  %v1848_v28 = vld [vmem:[%s2942_s3 + $0x8] sm:$0xff]  ;;  %v1847_v29 = vld [vmem:[%s2942_s3] sm:$0xff]  ;;  %v49_v30 = vld [vmem:[%s2940_s0 + $0x70] sm:$0xff] }
   0x9   :  { %574 = vmatpush.bf16.msra.mxu1 %v1853_v20  ;;  %v50_v31 = vld [vmem:[%s2940_s0 + $0x78] sm:$0xff]  ;;  %v51_v33 = vld [vmem:[%s2940_s0 + $0x80] sm:$0xff]  ;;  %v52_v34 = vld [vmem:[%s2940_s0 + $0x88] sm:$0xff] }
   0xa   :  { %1861 = vmatpush.bf16.msrb.mxu3 %v1853_v20  ;;  %v106_v32 = vpack.c.bf16 %v50_v31, %v49_v30  ;;  %v107_v35 = vpack.c.bf16 %v52_v34, %v51_v33  ;;  %v2024_v37 = vld [vmem:[%s2941_s2] ss:$0 sm:$0xff]  ;;  %v53_v43 = vld [vmem:[%s2940_s0 + $0x90] sm:$0xff]  ;;  %v54_v44 = vld [vmem:[%s2940_s0 + $0x98] sm:$0xff] }
   0xb   :  { %v108_v46 = vpack.c.bf16 %v54_v44, %v53_v43  ;;  %v55_v53 = vld [vmem:[%s2940_s0 + $0xa0] sm:$0xff]  ;;  %v56_v54 = vld [vmem:[%s2940_s0 + $0xa8] sm:$0xff]  ;;  %v57_v63 = vld [vmem:[%s2940_s0 + $0xb0] sm:$0xff] }
   0xc   :  { %v109_v56 = vpack.c.bf16 %v56_v54, %v55_v53  ;;  %v58_v0 = vld [vmem:[%s2940_s0 + $0xb8] sm:$0xff]  ;;  %v60_v10 = vld [vmem:[%s2940_s0 + $0xc8] sm:$0xff]  ;;  %v67_v54 = vld [vmem:[%s2940_s0 + $0x100] sm:$0xff] }
   0xd   :  { %575 = vmatpush.bf16.msra.mxu1 %v1852_v21  ;;  %v110_v2 = vpack.c.bf16 %v58_v0, %v57_v63  ;;  %v62_v20 = vld [vmem:[%s2940_s0 + $0xd8] sm:$0xff]  ;;  %v64_v30 = vld [vmem:[%s2940_s0 + $0xe8] sm:$0xff] }
   0xe   :  { %1862 = vmatpush.bf16.msrb.mxu3 %v1852_v21 }
  0x11   :  { %576 = vmatpush.bf16.msra.mxu1 %v1851_v22 }
  0x12   :  { %1863 = vmatpush.bf16.msrb.mxu3 %v1851_v22 }
  0x15   :  { %1735 = vmatmul.msk.bf16.gmra.mxu0 %vm143_vm0, %v100_v6  ;;  %577 = vmatpush.bf16.msra.mxu1 %v1850_v25 }
  0x16   :  { %1864 = vmatpush.bf16.msrb.mxu3 %v1850_v25 }
  0x19   :  { %578 = vmatpush.bf16.msra.mxu1 %v1849_v27 }
  0x1a   :  { %1865 = vmatpush.bf16.msrb.mxu3 %v1849_v27 }
  0x1d   :  { %579 = vmatpush.bf16.msra.mxu1 %v1848_v28 }
  0x1e   :  { %1866 = vmatpush.bf16.msrb.mxu3 %v1848_v28 }
  0x21   :  { %580 = vmatpush.bf16.msra.mxu1 %v1847_v29 }
  0x22   :  { %1867 = vmatpush.bf16.msrb.mxu3 %v1847_v29  ;;  %v63_v29 = vld [vmem:[%s2940_s0 + $0xe0] sm:$0xff] }
  0x25   :  { %1736 = vmatmul.msk.bf16.gmra.mxu0 %vm143_vm0, %v101_v9  ;;  %v59_v9 = vld [vmem:[%s2940_s0 + $0xc0] sm:$0xff] }
  0x35   :  { %1737 = vmatmul.msk.bf16.gmra.mxu0 %vm143_vm0, %v102_v12  ;;  %v111_v12 = vpack.c.bf16 %v60_v10, %v59_v9 }
  0x45   :  { %1738 = vmatmul.msk.bf16.gmra.mxu0 %vm143_vm0, %v103_v15 }
  0x55   :  { %1739 = vmatmul.msk.bf16.gmra.mxu0 %vm143_vm0, %v104_v19  ;;  %v61_v19 = vld [vmem:[%s2940_s0 + $0xd0] sm:$0xff] }
  0x56   :  { %v112_v22 = vpack.c.bf16 %v62_v20, %v61_v19 }
  0x65   :  { %1740 = vmatmul.msk.bf16.gmra.mxu0 %vm143_vm0, %v105_v26 }
  0x75   :  { %1741 = vmatmul.msk.bf16.gmra.mxu0 %vm143_vm0, %v106_v32  ;;  %v113_v32 = vpack.c.bf16 %v64_v30, %v63_v29 }
  0x82   :  { %v249_v36 = vpop.f32.mrf.mxu0 }
  0x83   :  { %v250_v38 = vadd.f32 %v2024_v37, %v249_v36 }
  0x85   :  { %1742 = vmatmul.msk.bf16.gmra.mxu0 %vm143_vm0, %v107_v35  ;;  %v409_v41 = vmax.f32 %v250_v38, 0.0 }
  0x8a   :  { %v251_v39 = vpop.f32.mrf.mxu0 }
  0x8b   :  { %v252_v40 = vadd.f32 %v2024_v37, %v251_v39 }
  0x8d   :  { %v410_v42 = vmax.f32 %v252_v40, 0.0  ;;  %v65_v40 = vld [vmem:[%s2940_s0 + $0xf0] sm:$0xff] }
  0x8f   :  { %v473_v45 = vpack.c.bf16 %v410_v42, %v409_v41  ;;  %v66_v41 = vld [vmem:[%s2940_s0 + $0xf8] sm:$0xff] }
  0x90   :  { %v2092_v42 = vld [vmem:[%s2944_s5 + $0x18] sm:$0xff]  ;;  %v114_v44 = vpack.c.bf16 %v66_v41, %v65_v40  ;;  %v73_v41 = vld [vmem:[%s2940_s0 + $0x130] sm:$0xff] }
  0x91   :  { %581 = vmatmul.bf16.vlgmr.msra.gmra.mxu1 %v473_v45  ;;  %1039 = vmatpush.bf16.msra.mxu2 %v2092_v42 }
  0x92   :  { %v254_v47 = vpop.f32.mrf.mxu0 }
  0x93   :  { %v255_v48 = vadd.f32 %v2024_v37, %v254_v47  ;;  %v2105_v47 = vld [vmem:[%s2944_s5 + $0x8] sm:$0xff] }
  0x95   :  { %1743 = vmatmul.msk.bf16.gmra.mxu0 %vm143_vm0, %v108_v46  ;;  %v411_v51 = vmax.f32 %v255_v48, 0.0  ;;  %v2098_v46 = vld [vmem:[%s2944_s5 + $0x10] sm:$0xff] }
  0x96   :  { %1040 = vmatpush.bf16.msra.mxu2 %v2098_v46 }
  0x9a   :  { %v256_v49 = vpop.f32.mrf.mxu0  ;;  %1041 = vmatpush.bf16.msra.mxu2 %v2105_v47 }
  0x9b   :  { %v257_v50 = vadd.f32 %v2024_v37, %v256_v49 }
  0x9d   :  { %v412_v52 = vmax.f32 %v257_v50, 0.0  ;;  %v2112_v50 = vld [vmem:[%s2944_s5] sm:$0xff] }
  0x9e   :  { %1042 = vmatpush.bf16.msra.mxu2 %v2112_v50 }
  0x9f   :  { %v474_v55 = vpack.c.bf16 %v412_v52, %v411_v51 }
  0xa1   :  { %586 = vmatmul.bf16.gmra.mxu1 %v474_v55  ;;  %v68_v55 = vld [vmem:[%s2940_s0 + $0x108] sm:$0xff] }
  0xa2   :  { %v259_v57 = vpop.f32.mrf.mxu0 }
  0xa3   :  { %v260_v58 = vadd.f32 %v2024_v37, %v259_v57  ;;  %v115_v57 = vpack.c.bf16 %v68_v55, %v67_v54 }
  0xa5   :  { %1744 = vmatmul.msk.bf16.gmra.mxu0 %vm143_vm0, %v109_v56  ;;  %v413_v61 = vmax.f32 %v260_v58, 0.0 }
  0xaa   :  { %v261_v59 = vpop.f32.mrf.mxu0 }
  0xab   :  { %v262_v60 = vadd.f32 %v2024_v37, %v261_v59 }
  0xad   :  { %v414_v62 = vmax.f32 %v262_v60, 0.0 }
  0xaf   :  { %v475_v1 = vpack.c.bf16 %v414_v62, %v413_v61 }
  0xb1   :  { %591 = vmatmul.bf16.gmra.mxu1 %v475_v1  ;;  %v69_v1 = vld [vmem:[%s2940_s0 + $0x110] sm:$0xff] }
  0xb2   :  { %v264_v3 = vpop.f32.mrf.mxu0 }
  0xb3   :  { %v265_v4 = vadd.f32 %v2024_v37, %v264_v3  ;;  %v2134_v3 = vld [vmem:[%s2943_s4] ss:$0 sm:$0xff] }
  0xb5   :  { %1745 = vmatmul.msk.bf16.gmra.mxu0 %vm143_vm0, %v110_v2  ;;  %v415_v7 = vmax.f32 %v265_v4, 0.0  ;;  %v70_v2 = vld [vmem:[%s2940_s0 + $0x118] sm:$0xff] }
  0xba   :  { %v266_v5 = vpop.f32.mrf.mxu0 }
  0xbb   :  { %v267_v6 = vadd.f32 %v2024_v37, %v266_v5  ;;  %v116_v5 = vpack.c.bf16 %v70_v2, %v69_v1  ;;  %v76_v1 = vld [vmem:[%s2940_s0 + $0x148] sm:$0xff] }
  0xbd   :  { %v416_v8 = vmax.f32 %v267_v6, 0.0 }
  0xbf   :  { %v476_v11 = vpack.c.bf16 %v416_v8, %v415_v7 }
  0xc1   :  { %596 = vmatmul.bf16.gmra.mxu1 %v476_v11 }
  0xc2   :  { %v269_v13 = vpop.f32.mrf.mxu0 }
  0xc3   :  { %v270_v14 = vadd.f32 %v2024_v37, %v269_v13 }
  0xc5   :  { %1746 = vmatmul.msk.bf16.gmra.mxu0 %vm143_vm0, %v111_v12  ;;  %v417_v17 = vmax.f32 %v270_v14, 0.0 }
  0xca   :  { %v271_v15 = vpop.f32.mrf.mxu0 }
  0xcb   :  { %v272_v16 = vadd.f32 %v2024_v37, %v271_v15 }
  0xcd   :  { %v418_v18 = vmax.f32 %v272_v16, 0.0 }
  0xcf   :  { %v477_v21 = vpack.c.bf16 %v418_v18, %v417_v17 }
  0xd1   :  { %601 = vmatmul.bf16.gmra.mxu1 %v477_v21  ;;  %v71_v21 = vld [vmem:[%s2940_s0 + $0x120] sm:$0xff] }
  0xd2   :  { %v274_v23 = vpop.f32.mrf.mxu0 }
  0xd3   :  { %v275_v24 = vadd.f32 %v2024_v37, %v274_v23 }
  0xd5   :  { %1747 = vmatmul.msk.bf16.gmra.mxu0 %vm143_vm0, %v112_v22  ;;  %v419_v27 = vmax.f32 %v275_v24, 0.0  ;;  %v72_v22 = vld [vmem:[%s2940_s0 + $0x128] sm:$0xff] }
  0xd6   :  { %v117_v24 = vpack.c.bf16 %v72_v22, %v71_v21  ;;  %v78_v21 = vld [vmem:[%s2940_s0 + $0x158] sm:$0xff] }
  0xda   :  { %v276_v25 = vpop.f32.mrf.mxu0 }
  0xdb   :  { %v277_v26 = vadd.f32 %v2024_v37, %v276_v25 }
  0xdd   :  { %v420_v28 = vmax.f32 %v277_v26, 0.0 }
  0xdf   :  { %v478_v31 = vpack.c.bf16 %v420_v28, %v419_v27 }
  0xe1   :  { %606 = vmatmul.bf16.gmra.mxu1 %v478_v31 }
  0xe2   :  { %v279_v33 = vpop.f32.mrf.mxu0 }
  0xe3   :  { %v280_v34 = vadd.f32 %v2024_v37, %v279_v33 }
  0xe5   :  { %1748 = vmatmul.msk.bf16.gmra.mxu0 %vm143_vm0, %v113_v32  ;;  %v421_v38 = vmax.f32 %v280_v34, 0.0 }
  0xea   :  { %v281_v35 = vpop.f32.mrf.mxu0 }
  0xeb   :  { %v282_v36 = vadd.f32 %v2024_v37, %v281_v35 }
  0xed   :  { %v422_v39 = vmax.f32 %v282_v36, 0.0 }
  0xef   :  { %v479_v43 = vpack.c.bf16 %v422_v39, %v421_v38 }
  0xf1   :  { %611 = vmatmul.bf16.gmra.mxu1 %v479_v43  ;;  %v74_v43 = vld [vmem:[%s2940_s0 + $0x138] sm:$0xff] }
  0xf2   :  { %v284_v45 = vpop.f32.mrf.mxu0 }
  0xf3   :  { %v285_v48 = vadd.f32 %v2024_v37, %v284_v45  ;;  %v118_v45 = vpack.c.bf16 %v74_v43, %v73_v41  ;;  %v80_v41 = vld [vmem:[%s2940_s0 + $0x168] sm:$0xff] }
  0xf5   :  { %1749 = vmatmul.msk.bf16.gmra.mxu0 %vm143_vm0, %v114_v44  ;;  %v423_v52 = vmax.f32 %v285_v48, 0.0 }
  0xfa   :  { %v286_v49 = vpop.f32.mrf.mxu0 }
  0xfb   :  { %v287_v51 = vadd.f32 %v2024_v37, %v286_v49 }
  0xfd   :  { %v424_v53 = vmax.f32 %v287_v51, 0.0 }
  0xff   :  { %v480_v56 = vpack.c.bf16 %v424_v53, %v423_v52 }
 0x101   :  { %616 = vmatmul.bf16.gmra.mxu1 %v480_v56 }
 0x102   :  { %v289_v58 = vpop.f32.mrf.mxu0 }
 0x103   :  { %v290_v59 = vadd.f32 %v2024_v37, %v289_v58 }
 0x105   :  { %1750 = vmatmul.msk.bf16.gmra.mxu0 %vm143_vm0, %v115_v57  ;;  %v425_v62 = vmax.f32 %v290_v59, 0.0 }
 0x10a   :  { %v291_v60 = vpop.f32.mrf.mxu0 }
 0x10b   :  { %v292_v61 = vadd.f32 %v2024_v37, %v291_v60 }
 0x10d   :  { %v426_v63 = vmax.f32 %v292_v61, 0.0 }
 0x10e   :  { %v582_v0 = vpop.f32.mrf.mxu1 }
 0x10f   :  { %v481_v4 = vpack.c.bf16 %v426_v63, %v425_v62  ;;  %v583_v7 = vadd.f32 %v2134_v3, %v582_v0  ;;  %v75_v0 = vld [vmem:[%s2940_s0 + $0x140] sm:$0xff] }
 0x111   :  { %621 = vmatmul.bf16.gmra.mxu1 %v481_v4  ;;  %v742_v9 = vmul.f32 0.01, %v583_v7  ;;  %v119_v4 = vpack.c.bf16 %v76_v1, %v75_v0 }
 0x112   :  { %v294_v6 = vpop.f32.mrf.mxu0 }
 0x113   :  { %v295_v11 = vadd.f32 %v2024_v37, %v294_v6  ;;  %v806_v14 = vmax.f32 %v583_v7, %v742_v9 }
 0x115   :  { %1751 = vmatmul.msk.bf16.gmra.mxu0 %vm143_vm0, %v116_v5  ;;  %v427_v17 = vmax.f32 %v295_v11, 0.0 }
 0x116   :  { %v584_v8 = vpop.f32.mrf.mxu1 }
 0x117   :  { %v585_v10 = vadd.f32 %v2134_v3, %v584_v8 }
 0x119   :  { %v743_v12 = vmul.f32 0.01, %v585_v10 }
 0x11a   :  { %v296_v13 = vpop.f32.mrf.mxu0 }
 0x11b   :  { %v807_v15 = vmax.f32 %v585_v10, %v743_v12  ;;  %v297_v16 = vadd.f32 %v2024_v37, %v296_v13 }
 0x11d   :  { %v428_v18 = vmax.f32 %v297_v16, 0.0  ;;  %v870_v19 = vpack.c.bf16 %v807_v15, %v806_v14 }
 0x11e   :  { %v587_v20 = vpop.f32.mrf.mxu1 }
 0x11f   :  { %1814 = vmatmul.msk.bf16.vlgmr.msra.gmra.mxu2 %vm938_vm1, %v870_v19  ;;  %v482_v23 = vpack.c.bf16 %v428_v18, %v427_v17  ;;  %v588_v26 = vadd.f32 %v2134_v3, %v587_v20  ;;  %v77_v20 = vld [vmem:[%s2940_s0 + $0x150] sm:$0xff] }
 0x121   :  { %626 = vmatmul.bf16.gmra.mxu1 %v482_v23  ;;  %v744_v28 = vmul.f32 0.01, %v588_v26  ;;  %v120_v23 = vpack.c.bf16 %v78_v21, %v77_v20  ;;  %v83_v21 = vld [vmem:[%s2940_s0 + $0x180] sm:$0xff] }
 0x122   :  { %v299_v25 = vpop.f32.mrf.mxu0 }
 0x123   :  { %v300_v30 = vadd.f32 %v2024_v37, %v299_v25  ;;  %v808_v33 = vmax.f32 %v588_v26, %v744_v28 }
 0x125   :  { %1752 = vmatmul.msk.bf16.gmra.mxu0 %vm143_vm0, %v117_v24  ;;  %v429_v36 = vmax.f32 %v300_v30, 0.0 }
 0x126   :  { %v589_v27 = vpop.f32.mrf.mxu1 }
 0x127   :  { %v590_v29 = vadd.f32 %v2134_v3, %v589_v27 }
 0x129   :  { %v745_v31 = vmul.f32 0.01, %v590_v29 }
 0x12a   :  { %v301_v32 = vpop.f32.mrf.mxu0 }
 0x12b   :  { %v809_v34 = vmax.f32 %v590_v29, %v745_v31  ;;  %v302_v35 = vadd.f32 %v2024_v37, %v301_v32 }
 0x12d   :  { %v430_v38 = vmax.f32 %v302_v35, 0.0  ;;  %v871_v39 = vpack.c.bf16 %v809_v34, %v808_v33 }
 0x12e   :  { %v592_v40 = vpop.f32.mrf.mxu1 }
 0x12f   :  { %1815 = vmatmul.msk.bf16.gmra.mxu2 %vm938_vm1, %v871_v39  ;;  %v483_v44 = vpack.c.bf16 %v430_v38, %v429_v36  ;;  %v593_v49 = vadd.f32 %v2134_v3, %v592_v40  ;;  %v79_v40 = vld [vmem:[%s2940_s0 + $0x160] sm:$0xff] }
 0x131   :  { %631 = vmatmul.bf16.gmra.mxu1 %v483_v44  ;;  %v746_v52 = vmul.f32 0.01, %v593_v49  ;;  %v121_v44 = vpack.c.bf16 %v80_v41, %v79_v40 }
 0x132   :  { %v304_v48 = vpop.f32.mrf.mxu0 }
 0x133   :  { %v305_v54 = vadd.f32 %v2024_v37, %v304_v48  ;;  %v810_v57 = vmax.f32 %v593_v49, %v746_v52  ;;  %v85_v49 = vld [vmem:[%s2940_s0 + $0x190] sm:$0xff] }
 0x135   :  { %1753 = vmatmul.msk.bf16.gmra.mxu0 %vm143_vm0, %v118_v45  ;;  %v431_v60 = vmax.f32 %v305_v54, 0.0 }
 0x136   :  { %v594_v51 = vpop.f32.mrf.mxu1 }
 0x137   :  { %v595_v53 = vadd.f32 %v2134_v3, %v594_v51  ;;  %v86_v51 = vld [vmem:[%s2940_s0 + $0x198] sm:$0xff] }
 0x138   :  { %v124_v52 = vpack.c.bf16 %v86_v51, %v85_v49  ;;  %v91_v51 = vld [vmem:[%s2940_s0 + $0x1c0] sm:$0xff] }
 0x139   :  { %v747_v55 = vmul.f32 0.01, %v595_v53 }
 0x13a   :  { %v306_v56 = vpop.f32.mrf.mxu0  ;;  %1759 = vmatmul.msk.bf16.vlgmr.msra.gmra.mxu3 %vm143_vm0, %v124_v52  ;;  %v92_v52 = vld [vmem:[%s2940_s0 + $0x1c8] sm:$0xff] }
 0x13b   :  { %v811_v58 = vmax.f32 %v595_v53, %v747_v55  ;;  %v307_v59 = vadd.f32 %v2024_v37, %v306_v56  ;;  %1868 = vmatpush.bf16.msra.mxu3 %v2092_v42  ;;  %v82_v42 = vld [vmem:[%s2940_s0 + $0x178] sm:$0xff] }
 0x13d   :  { %v432_v61 = vmax.f32 %v307_v59, 0.0  ;;  %v872_v62 = vpack.c.bf16 %v811_v58, %v810_v57 }
 0x13e   :  { %v597_v63 = vpop.f32.mrf.mxu1 }
 0x13f   :  { %1816 = vmatmul.msk.bf16.gmra.mxu2 %vm938_vm1, %v872_v62  ;;  %v484_v2 = vpack.c.bf16 %v432_v61, %v431_v60  ;;  %v598_v6 = vadd.f32 %v2134_v3, %v597_v63  ;;  %1869 = vmatpush.bf16.msra.mxu3 %v2098_v46 }
 0x141   :  { %636 = vmatmul.bf16.gmra.mxu1 %v484_v2  ;;  %v748_v8 = vmul.f32 0.01, %v598_v6  ;;  %v81_v2 = vld [vmem:[%s2940_s0 + $0x170] sm:$0xff] }
 0x142   :  { %v309_v5 = vpop.f32.mrf.mxu0 }
 0x143   :  { %v310_v10 = vadd.f32 %v2024_v37, %v309_v5  ;;  %v812_v13 = vmax.f32 %v598_v6, %v748_v8  ;;  %1870 = vmatpush.bf16.msra.mxu3 %v2105_v47  ;;  %v122_v5 = vpack.c.bf16 %v82_v42, %v81_v2  ;;  %v88_v8 = vld [vmem:[%s2940_s0 + $0x1a8] sm:$0xff] }
 0x145   :  { %1754 = vmatmul.msk.bf16.gmra.mxu0 %vm143_vm0, %v119_v4  ;;  %v433_v16 = vmax.f32 %v310_v10, 0.0 }
 0x146   :  { %v599_v7 = vpop.f32.mrf.mxu1 }
 0x147   :  { %v600_v9 = vadd.f32 %v2134_v3, %v599_v7  ;;  %v87_v7 = vld [vmem:[%s2940_s0 + $0x1a0] sm:$0xff]  ;;  %1871 = vmatpush.bf16.msra.mxu3 %v2112_v50 }
 0x149   :  { %v749_v11 = vmul.f32 0.01, %v600_v9 }
 0x14a   :  { %v311_v12 = vpop.f32.mrf.mxu0 }
 0x14b   :  { %v813_v14 = vmax.f32 %v600_v9, %v749_v11  ;;  %v312_v15 = vadd.f32 %v2024_v37, %v311_v12  ;;  %v125_v9 = vpack.c.bf16 %v88_v8, %v87_v7  ;;  %v93_v8 = vld [vmem:[%s2940_s0 + $0x1d0] sm:$0xff] }
 0x14d   :  { %v434_v17 = vmax.f32 %v312_v15, 0.0  ;;  %v873_v18 = vpack.c.bf16 %v813_v14, %v812_v13  ;;  %1760 = vmatmul.msk.bf16.gmra.mxu3 %vm143_vm0, %v125_v9  ;;  %v94_v9 = vld [vmem:[%s2940_s0 + $0x1d8] sm:$0xff] }
 0x14e   :  { %v602_v19 = vpop.f32.mrf.mxu1 }
 0x14f   :  { %1817 = vmatmul.msk.bf16.gmra.mxu2 %vm938_vm1, %v873_v18  ;;  %v485_v22 = vpack.c.bf16 %v434_v17, %v433_v16  ;;  %v603_v25 = vadd.f32 %v2134_v3, %v602_v19 }
 0x151   :  { %641 = vmatmul.bf16.gmra.mxu1 %v485_v22  ;;  %v750_v27 = vmul.f32 0.01, %v603_v25  ;;  %v84_v22 = vld [vmem:[%s2940_s0 + $0x188] sm:$0xff] }
 0x152   :  { %v314_v24 = vpop.f32.mrf.mxu0 }
 0x153   :  { %v315_v29 = vadd.f32 %v2024_v37, %v314_v24  ;;  %v814_v32 = vmax.f32 %v603_v25, %v750_v27  ;;  %v123_v24 = vpack.c.bf16 %v84_v22, %v83_v21  ;;  %v89_v27 = vld [vmem:[%s2940_s0 + $0x1b0] sm:$0xff] }
 0x155   :  { %1755 = vmatmul.msk.bf16.gmra.mxu0 %vm143_vm0, %v120_v23  ;;  %v435_v35 = vmax.f32 %v315_v29, 0.0 }
 0x156   :  { %v604_v26 = vpop.f32.mrf.mxu1 }
 0x157   :  { %v605_v28 = vadd.f32 %v2134_v3, %v604_v26 }
 0x159   :  { %v751_v30 = vmul.f32 0.01, %v605_v28 }
 0x15a   :  { %v316_v31 = vpop.f32.mrf.mxu0 }
 0x15b   :  { %v815_v33 = vmax.f32 %v605_v28, %v751_v30  ;;  %v317_v34 = vadd.f32 %v2024_v37, %v316_v31  ;;  %v90_v28 = vld [vmem:[%s2940_s0 + $0x1b8] sm:$0xff] }
 0x15c   :  { %v126_v29 = vpack.c.bf16 %v90_v28, %v89_v27 }
 0x15d   :  { %v436_v36 = vmax.f32 %v317_v34, 0.0  ;;  %v874_v38 = vpack.c.bf16 %v815_v33, %v814_v32 }
 0x15e   :  { %v607_v39 = vpop.f32.mrf.mxu1  ;;  %1761 = vmatmul.msk.bf16.gmra.mxu3 %vm143_vm0, %v126_v29 }
 0x15f   :  { %v486_v43 = vpack.c.bf16 %v436_v36, %v435_v35  ;;  %1818 = vmatmul.msk.bf16.gmra.mxu2 %vm938_vm1, %v874_v38  ;;  %v608_v48 = vadd.f32 %v2134_v3, %v607_v39 }
 0x161   :  { %646 = vmatmul.bf16.gmra.mxu1 %v486_v43  ;;  %v752_v54 = vmul.f32 0.01, %v608_v48 }
 0x162   :  { %v319_v45 = vpop.f32.mrf.mxu0 }
 0x163   :  { %v320_v56 = vadd.f32 %v2024_v37, %v319_v45  ;;  %v816_v59 = vmax.f32 %v608_v48, %v752_v54 }
 0x165   :  { %1756 = vmatmul.msk.bf16.gmra.mxu0 %vm143_vm0, %v121_v44  ;;  %v437_v62 = vmax.f32 %v320_v56, 0.0 }
 0x166   :  { %v609_v53 = vpop.f32.mrf.mxu1 }
 0x167   :  { %v610_v55 = vadd.f32 %v2134_v3, %v609_v53  ;;  %v127_v53 = vpack.c.bf16 %v92_v52, %v91_v51 }
 0x169   :  { %v753_v57 = vmul.f32 0.01, %v610_v55 }
 0x16a   :  { %v321_v58 = vpop.f32.mrf.mxu0 }
 0x16b   :  { %v817_v60 = vmax.f32 %v610_v55, %v753_v57  ;;  %v322_v61 = vadd.f32 %v2024_v37, %v321_v58 }
 0x16d   :  { %v438_v63 = vmax.f32 %v322_v61, 0.0  ;;  %v875_v0 = vpack.c.bf16 %v817_v60, %v816_v59 }
 0x16e   :  { %v612_v1 = vpop.f32.mrf.mxu1  ;;  %1762 = vmatmul.msk.bf16.gmra.mxu3 %vm143_vm0, %v127_v53 }
 0x16f   :  { %v487_v4 = vpack.c.bf16 %v438_v63, %v437_v62  ;;  %1819 = vmatmul.msk.bf16.gmra.mxu2 %vm938_vm1, %v875_v0  ;;  %v613_v6 = vadd.f32 %v2134_v3, %v612_v1 }
 0x171   :  { %651 = vmatmul.bf16.gmra.mxu1 %v487_v4  ;;  %v754_v47 = vmul.f32 0.01, %v613_v6  ;;  %v2266_v4 = vld [vmem:[%s2945_s6] ss:$0 sm:$0xff] }
 0x172   :  { %v324_v46 = vpop.f32.mrf.mxu0 }
 0x173   :  { %v325_v12 = vadd.f32 %v2024_v37, %v324_v46  ;;  %v818_v15 = vmax.f32 %v613_v6, %v754_v47  ;;  %v2279_v47 = vld [vmem:[%s2946_s7] ss:$0 sm:$0xff] }
 0x175   :  { %1757 = vmatmul.msk.bf16.gmra.mxu0 %vm143_vm0, %v122_v5  ;;  %v439_v18 = vmax.f32 %v325_v12, 0.0 }
 0x176   :  { %v614_v10 = vpop.f32.mrf.mxu1 }
 0x177   :  { %v615_v11 = vadd.f32 %v2134_v3, %v614_v10 }
 0x179   :  { %v755_v13 = vmul.f32 0.01, %v615_v11 }
 0x17a   :  { %v326_v14 = vpop.f32.mrf.mxu0 }
 0x17b   :  { %v819_v16 = vmax.f32 %v615_v11, %v755_v13  ;;  %v327_v17 = vadd.f32 %v2024_v37, %v326_v14  ;;  %v128_v11 = vpack.c.bf16 %v94_v9, %v93_v8 }
 0x17d   :  { %v440_v19 = vmax.f32 %v327_v17, 0.0  ;;  %v876_v50 = vpack.c.bf16 %v819_v16, %v818_v15 }
 0x17e   :  { %v617_v20 = vpop.f32.mrf.mxu1  ;;  %1763 = vmatmul.msk.bf16.gmra.mxu3 %vm143_vm0, %v128_v11  ;;  %v98_v11 = vld [vmem:[%s2940_s0 + $0x1f8] sm:$0xff] }
 0x17f   :  { %v488_v23 = vpack.c.bf16 %v440_v19, %v439_v18  ;;  %1820 = vmatmul.msk.bf16.gmra.mxu2 %vm938_vm1, %v876_v50  ;;  %v618_v26 = vadd.f32 %v2134_v3, %v617_v20 }
 0x181   :  { %656 = vmatmul.bf16.gmra.mxu1 %v488_v23  ;;  %v756_v31 = vmul.f32 0.01, %v618_v26 }
 0x182   :  { %v329_v25 = vpop.f32.mrf.mxu0 }
 0x183   :  { %v330_v33 = vadd.f32 %v2024_v37, %v329_v25  ;;  %v820_v36 = vmax.f32 %v618_v26, %v756_v31 }
 0x185   :  { %1758 = vmatmul.msk.bf16.gmra.mxu0 %vm143_vm0, %v123_v24  ;;  %v441_v40 = vmax.f32 %v330_v33, 0.0 }
 0x186   :  { %v619_v30 = vpop.f32.mrf.mxu1 }
 0x187   :  { %v620_v32 = vadd.f32 %v2134_v3, %v619_v30 }
 0x189   :  { %v757_v34 = vmul.f32 0.01, %v620_v32 }
 0x18a   :  { %v331_v35 = vpop.f32.mrf.mxu0 }
 0x18b   :  { %v821_v38 = vmax.f32 %v620_v32, %v757_v34  ;;  %v332_v39 = vadd.f32 %v2024_v37, %v331_v35 }
 0x18d   :  { %v442_v41 = vmax.f32 %v332_v39, 0.0  ;;  %v877_v43 = vpack.c.bf16 %v821_v38, %v820_v36  ;;  %v95_v39 = vld [vmem:[%s2940_s0 + $0x1e0] sm:$0xff] }
 0x18e   :  { %v622_v44 = vpop.f32.mrf.mxu1 }
 0x18f   :  { %v489_v45 = vpack.c.bf16 %v442_v41, %v441_v40  ;;  %1821 = vmatmul.msk.bf16.gmra.mxu2 %vm938_vm1, %v877_v43  ;;  %v623_v49 = vadd.f32 %v2134_v3, %v622_v44  ;;  %v96_v40 = vld [vmem:[%s2940_s0 + $0x1e8] sm:$0xff] }
 0x190   :  { %v129_v43 = vpack.c.bf16 %v96_v40, %v95_v39 }
 0x191   :  { %661 = vmatmul.bf16.gmra.mxu1 %v489_v45  ;;  %v758_v55 = vmul.f32 0.01, %v623_v49 }
 0x192   :  { %v334_v48 = vpop.f32.mrf.mxu0  ;;  %1764 = vmatmul.msk.bf16.gmra.mxu3 %vm143_vm0, %v129_v43 }
 0x193   :  { %v335_v57 = vadd.f32 %v2024_v37, %v334_v48  ;;  %v822_v60 = vmax.f32 %v623_v49, %v758_v55 }
 0x195   :  { %v443_v63 = vmax.f32 %v335_v57, 0.0 }
 0x196   :  { %v624_v54 = vpop.f32.mrf.mxu1 }
 0x197   :  { %v625_v56 = vadd.f32 %v2134_v3, %v624_v54 }
 0x199   :  { %v759_v58 = vmul.f32 0.01, %v625_v56 }
 0x19a   :  { %v336_v59 = vpop.f32.mrf.mxu0 }
 0x19b   :  { %v823_v61 = vmax.f32 %v625_v56, %v759_v58  ;;  %v337_v62 = vadd.f32 %v2024_v37, %v336_v59 }
 0x19d   :  { %v444_v0 = vmax.f32 %v337_v62, 0.0  ;;  %v878_v1 = vpack.c.bf16 %v823_v61, %v822_v60 }
 0x19e   :  { %v627_v2 = vpop.f32.mrf.mxu1 }
 0x19f   :  { %v490_v42 = vpack.c.bf16 %v444_v0, %v443_v63  ;;  %1822 = vmatmul.msk.bf16.gmra.mxu2 %vm938_vm1, %v878_v1  ;;  %v628_v5 = vadd.f32 %v2134_v3, %v627_v2 }
 0x1a1   :  { %666 = vmatmul.bf16.gmra.mxu1 %v490_v42  ;;  %v760_v12 = vmul.f32 0.01, %v628_v5 }
 0x1a2   :  { %v339_v46 = vpop.f32.mrf.mxu0  ;;  %v1044_v6 = vpop.f32.mrf.mxu2 }
 0x1a3   :  { %v1045_v7 = vadd.f32 %v2266_v4, %v1044_v6  ;;  %v340_v16 = vadd.f32 %v2024_v37, %v339_v46  ;;  %v824_v19 = vmax.f32 %v628_v5, %v760_v12 }
 0x1a5   :  { %v1204_v10 = vmul.f32 0.01, %v1045_v7  ;;  %v445_v25 = vmax.f32 %v340_v16, 0.0 }
 0x1a6   :  { %v629_v13 = vpop.f32.mrf.mxu1 }
 0x1a7   :  { %v1268_v14 = vmax.f32 %v1045_v7, %v1204_v10  ;;  %v630_v15 = vadd.f32 %v2134_v3, %v629_v13  ;;  %v97_v10 = vld [vmem:[%s2940_s0 + $0x1f0] sm:$0xff] }
 0x1a8   :  { %v130_v13 = vpack.c.bf16 %v98_v11, %v97_v10 }
 0x1a9   :  { %v761_v17 = vmul.f32 0.01, %v630_v15  ;;  %v1336_v18 = vmul.f32 %v2279_v47, %v1268_v14 }
 0x1aa   :  { %v341_v50 = vpop.f32.mrf.mxu0  ;;  %v1046_v20 = vpop.f32.mrf.mxu2  ;;  %1765 = vmatmul.msk.bf16.gmra.mxu3 %vm143_vm0, %v130_v13 }
 0x1ab   :  { %v825_v21 = vmax.f32 %v630_v15, %v761_v17  ;;  %v342_v22 = vadd.f32 %v2024_v37, %v341_v50  ;;  %v1047_v23 = vadd.f32 %v2266_v4, %v1046_v20  ;;  %v1401_v24 = vsel %vm1400_vm2, %v1336_v18, 0.0 }
 0x1ac   :  { %1402 = vadd.xlane.f32.xlu0 %v1401_v24 }
 0x1ad   :  { %v446_v26 = vmax.f32 %v342_v22, 0.0  ;;  %v1205_v27 = vmul.f32 0.01, %v1047_v23  ;;  %v879_v28 = vpack.c.bf16 %v825_v21, %v824_v19 }
 0x1ae   :  { %v632_v29 = vpop.f32.mrf.mxu1 }
 0x1af   :  { %v491_v30 = vpack.c.bf16 %v446_v26, %v445_v25  ;;  %v1269_v31 = vmax.f32 %v1047_v23, %v1205_v27  ;;  %1823 = vmatmul.msk.bf16.gmra.mxu2 %vm938_vm1, %v879_v28  ;;  %v633_v33 = vadd.f32 %v2134_v3, %v632_v29 }
 0x1b1   :  { %671 = vmatmul.bf16.gmra.mxu1 %v491_v30  ;;  %v1337_v32 = vmul.f32 %v2279_v47, %v1269_v31  ;;  %v762_v44 = vmul.f32 0.01, %v633_v33 }
 0x1b2   :  { %v344_v34 = vpop.f32.mrf.mxu0  ;;  %v1049_v35 = vpop.f32.mrf.mxu2 }
 0x1b3   :  { %v1050_v36 = vadd.f32 %v2266_v4, %v1049_v35  ;;  %v1404_v38 = vsel %vm1400_vm2, %v1337_v32, 0.0  ;;  %v345_v51 = vadd.f32 %v2024_v37, %v344_v34  ;;  %v826_v54 = vmax.f32 %v633_v33, %v762_v44 }
 0x1b4   :  { %1405 = vadd.xlane.f32.xlu0 %v1404_v38 }
 0x1b5   :  { %v1206_v41 = vmul.f32 0.01, %v1050_v36  ;;  %v447_v61 = vmax.f32 %v345_v51, 0.0 }
 0x1b6   :  { %v634_v45 = vpop.f32.mrf.mxu1 }
 0x1b7   :  { %v1270_v48 = vmax.f32 %v1050_v36, %v1206_v41  ;;  %v635_v49 = vadd.f32 %v2134_v3, %v634_v45 }
 0x1b9   :  { %v763_v52 = vmul.f32 0.01, %v635_v49  ;;  %v1338_v53 = vmul.f32 %v2279_v47, %v1270_v48 }
 0x1ba   :  { %v346_v55 = vpop.f32.mrf.mxu0  ;;  %v1051_v56 = vpop.f32.mrf.mxu2 }
 0x1bb   :  { %v827_v57 = vmax.f32 %v635_v49, %v763_v52  ;;  %v347_v58 = vadd.f32 %v2024_v37, %v346_v55  ;;  %v1052_v59 = vadd.f32 %v2266_v4, %v1051_v56  ;;  %v1407_v60 = vsel %vm1400_vm2, %v1338_v53, 0.0 }
 0x1bc   :  { %1408 = vadd.xlane.f32.xlu1 %v1407_v60 }
 0x1bd   :  { %v448_v62 = vmax.f32 %v347_v58, 0.0  ;;  %v1207_v63 = vmul.f32 0.01, %v1052_v59  ;;  %v880_v0 = vpack.c.bf16 %v827_v57, %v826_v54 }
 0x1be   :  { %v637_v1 = vpop.f32.mrf.mxu1 }
 0x1bf   :  { %v492_v2 = vpack.c.bf16 %v448_v62, %v447_v61  ;;  %v1271_v42 = vmax.f32 %v1052_v59, %v1207_v63  ;;  %1824 = vmatmul.msk.bf16.gmra.mxu2 %vm938_vm1, %v880_v0  ;;  %v638_v46 = vadd.f32 %v2134_v3, %v637_v1 }
 0x1c1   :  { %676 = vmatmul.bf16.gmra.mxu1 %v492_v2  ;;  %v1339_v5 = vmul.f32 %v2279_v47, %v1271_v42  ;;  %v764_v14 = vmul.f32 0.01, %v638_v46 }
 0x1c2   :  { %v349_v6 = vpop.f32.mrf.mxu0  ;;  %v1054_v7 = vpop.f32.mrf.mxu2 }
 0x1c3   :  { %v1055_v8 = vadd.f32 %v2266_v4, %v1054_v7  ;;  %v1410_v9 = vsel %vm1400_vm2, %v1339_v5, 0.0  ;;  %v350_v18 = vadd.f32 %v2024_v37, %v349_v6  ;;  %v828_v20 = vmax.f32 %v638_v46, %v764_v14 }
 0x1c4   :  { %1411 = vadd.xlane.f32.xlu1 %v1410_v9 }
 0x1c5   :  { %v1208_v12 = vmul.f32 0.01, %v1055_v8  ;;  %v449_v27 = vmax.f32 %v350_v18, 0.0 }
 0x1c6   :  { %v639_v15 = vpop.f32.mrf.mxu1 }
 0x1c7   :  { %v1272_v16 = vmax.f32 %v1055_v8, %v1208_v12  ;;  %v640_v17 = vadd.f32 %v2134_v3, %v639_v15 }
 0x1c9   :  { %v765_v19 = vmul.f32 0.01, %v640_v17  ;;  %v1340_v50 = vmul.f32 %v2279_v47, %v1272_v16 }
 0x1ca   :  { %v351_v21 = vpop.f32.mrf.mxu0  ;;  %v1056_v22 = vpop.f32.mrf.mxu2 }
 0x1cb   :  { %v829_v23 = vmax.f32 %v640_v17, %v765_v19  ;;  %v352_v24 = vadd.f32 %v2024_v37, %v351_v21  ;;  %v1057_v25 = vadd.f32 %v2266_v4, %v1056_v22  ;;  %v1413_v26 = vsel %vm1400_vm2, %v1340_v50, 0.0 }
 0x1cc   :  { %1414 = vadd.xlane.f32.xlu2 %v1413_v26 }
 0x1cd   :  { %v450_v28 = vmax.f32 %v352_v24, 0.0  ;;  %v1209_v29 = vmul.f32 0.01, %v1057_v25  ;;  %v881_v30 = vpack.c.bf16 %v829_v23, %v828_v20 }
 0x1ce   :  { %v642_v31 = vpop.f32.mrf.mxu1 }
 0x1cf   :  { %v493_v32 = vpack.c.bf16 %v450_v28, %v449_v27  ;;  %v1273_v33 = vmax.f32 %v1057_v25, %v1209_v29  ;;  %1825 = vmatmul.msk.bf16.gmra.mxu2 %vm938_vm1, %v881_v30  ;;  %v643_v35 = vadd.f32 %v2134_v3, %v642_v31  ;;  %v2348_v31 = vpop.f32.mrf.mxu3 }
 0x1d1   :  { %681 = vmatmul.bf16.gmra.mxu1 %v493_v32  ;;  %v1341_v34 = vmul.f32 %v2279_v47, %v1273_v33  ;;  %v766_v43 = vmul.f32 0.01, %v643_v35 }
 0x1d2   :  { %v354_v36 = vpop.f32.mrf.mxu0  ;;  %v1059_v38 = vpop.f32.mrf.mxu2 }
 0x1d3   :  { %v1060_v39 = vadd.f32 %v2266_v4, %v1059_v38  ;;  %v1416_v40 = vsel %vm1400_vm2, %v1341_v34, 0.0  ;;  %v355_v49 = vadd.f32 %v2024_v37, %v354_v36  ;;  %v830_v53 = vmax.f32 %v643_v35, %v766_v43 }
 0x1d4   :  { %1417 = vadd.xlane.f32.xlu2 %v1416_v40  ;;  %v14_v40 = vstv %s2947_s8 }
 0x1d5   :  { %v1210_v41 = vmul.f32 0.01, %v1060_v39  ;;  %v451_v60 = vmax.f32 %v355_v49, 0.0  ;;  %15 = vst [vmem:[#allocation2] sm:$0x1] %v14_v40 }
 0x1d6   :  { %v644_v44 = vpop.f32.mrf.mxu1 }
 0x1d7   :  { %v1274_v45 = vmax.f32 %v1060_v39, %v1210_v41  ;;  %v645_v48 = vadd.f32 %v2134_v3, %v644_v44  ;;  %v2360_v44 = vld [vmem:[%s2941_s2] ss:$0 sm:$0xff] }
 0x1d9   :  { %v767_v51 = vmul.f32 0.01, %v645_v48  ;;  %v1342_v52 = vmul.f32 %v2279_v47, %v1274_v45 }
 0x1da   :  { %v356_v54 = vpop.f32.mrf.mxu0  ;;  %v1061_v55 = vpop.f32.mrf.mxu2 }
 0x1db   :  { %v831_v56 = vmax.f32 %v645_v48, %v767_v51  ;;  %v357_v57 = vadd.f32 %v2024_v37, %v356_v54  ;;  %v1062_v58 = vadd.f32 %v2266_v4, %v1061_v55  ;;  %v1419_v59 = vsel %vm1400_vm2, %v1342_v52, 0.0 }
 0x1dc   :  { %1420 = vadd.xlane.f32.xlu0 %v1419_v59 }
 0x1dd   :  { %v882_v61 = vpack.c.bf16 %v831_v56, %v830_v53  ;;  %v452_v62 = vmax.f32 %v357_v57, 0.0  ;;  %v1211_v63 = vmul.f32 0.01, %v1062_v58 }
 0x1de   :  { %v647_v0 = vpop.f32.mrf.mxu1 }
 0x1df   :  { %v494_v1 = vpack.c.bf16 %v452_v62, %v451_v60  ;;  %v1275_v2 = vmax.f32 %v1062_v58, %v1211_v63  ;;  %1826 = vmatmul.msk.bf16.gmra.mxu2 %vm938_vm1, %v882_v61  ;;  %v648_v5 = vadd.f32 %v2134_v3, %v647_v0  ;;  %v376_v58 = vpop.f32.mrf.mxu3 }
 0x1e1   :  { %686 = vmatmul.bf16.gmra.mxu1 %v494_v1  ;;  %v1343_v42 = vmul.f32 %v2279_v47, %v1275_v2  ;;  %v768_v10 = vmul.f32 0.01, %v648_v5 }
 0x1e2   :  { %v359_v46 = vpop.f32.mrf.mxu0  ;;  %v1064_v6 = vpop.f32.mrf.mxu2 }
 0x1e3   :  { %v1065_v7 = vadd.f32 %v2266_v4, %v1064_v6  ;;  %v1422_v8 = vsel %vm1400_vm2, %v1343_v42, 0.0  ;;  %v360_v14 = vadd.f32 %v2024_v37, %v359_v46  ;;  %v832_v17 = vmax.f32 %v648_v5, %v768_v10 }
 0x1e4   :  { %1423 = vadd.xlane.f32.xlu1 %v1422_v8 }
 0x1e5   :  { %v1212_v9 = vmul.f32 0.01, %v1065_v7  ;;  %v453_v23 = vmax.f32 %v360_v14, 0.0 }
 0x1e6   :  { %v649_v11 = vpop.f32.mrf.mxu1 }
 0x1e7   :  { %v1276_v12 = vmax.f32 %v1065_v7, %v1212_v9  ;;  %v650_v13 = vadd.f32 %v2134_v3, %v649_v11  ;;  %v2372_v9 = vpop.f32.mrf.mxu3 }
 0x1e9   :  { %v769_v15 = vmul.f32 0.01, %v650_v13  ;;  %v1344_v16 = vmul.f32 %v2279_v47, %v1276_v12 }
 0x1ea   :  { %v361_v18 = vpop.f32.mrf.mxu0  ;;  %v1066_v19 = vpop.f32.mrf.mxu2 }
 0x1eb   :  { %v833_v50 = vmax.f32 %v650_v13, %v769_v15  ;;  %v362_v20 = vadd.f32 %v2024_v37, %v361_v18  ;;  %v1067_v21 = vadd.f32 %v2266_v4, %v1066_v19  ;;  %v1425_v22 = vsel %vm1400_vm2, %v1344_v16, 0.0 }
 0x1ec   :  { %1426 = vadd.xlane.f32.xlu2 %v1425_v22 }
 0x1ed   :  { %v883_v24 = vpack.c.bf16 %v833_v50, %v832_v17  ;;  %v454_v25 = vmax.f32 %v362_v20, 0.0  ;;  %v1213_v26 = vmul.f32 0.01, %v1067_v21 }
 0x1ee   :  { %v652_v27 = vpop.f32.mrf.mxu1 }
 0x1ef   :  { %v495_v28 = vpack.c.bf16 %v454_v25, %v453_v23  ;;  %v1277_v29 = vmax.f32 %v1067_v21, %v1213_v26  ;;  %1827 = vmatmul.msk.bf16.gmra.mxu2 %vm938_vm1, %v883_v24  ;;  %v653_v37 = vadd.f32 %v2134_v3, %v652_v27 }
 0x1f1   :  { %691 = vmatmul.bf16.gmra.mxu1 %v495_v28  ;;  %v1345_v30 = vmul.f32 %v2279_v47, %v1277_v29  ;;  %v770_v38 = vmul.f32 0.01, %v653_v37 }
 0x1f2   :  { %v364_v32 = vpop.f32.mrf.mxu0  ;;  %v1069_v33 = vpop.f32.mrf.mxu2 }
 0x1f3   :  { %v1070_v34 = vadd.f32 %v2266_v4, %v1069_v33  ;;  %v1428_v35 = vsel %vm1400_vm2, %v1345_v30, 0.0  ;;  %v365_v45 = vadd.f32 %v2360_v44, %v364_v32  ;;  %v834_v51 = vmax.f32 %v653_v37, %v770_v38  ;;  %v381_v30 = vpop.f32.mrf.mxu3 }
 0x1f4   :  { %1429 = vadd.xlane.f32.xlu0 %v1428_v35  ;;  %v375_v38 = vadd.f32 %v2360_v44, %v2348_v31 }
 0x1f5   :  { %v1214_v36 = vmul.f32 0.01, %v1070_v34  ;;  %v455_v59 = vmax.f32 %v365_v45, 0.0 }
 0x1f6   :  { %v654_v39 = vpop.f32.mrf.mxu1 }
 0x1f7   :  { %v1278_v41 = vmax.f32 %v1070_v34, %v1214_v36  ;;  %v655_v43 = vadd.f32 %v2134_v3, %v654_v39  ;;  %v377_v39 = vadd.f32 %v2360_v44, %v376_v58  ;;  %v2394_v58 = vld [vmem:[#allocation2] ss:$0 sm:$0xff] }
 0x1f9   :  { %v771_v48 = vmul.f32 0.01, %v655_v43  ;;  %v1346_v49 = vmul.f32 %v2279_v47, %v1278_v41 }
 0x1fa   :  { %v366_v52 = vpop.f32.mrf.mxu0  ;;  %v1071_v53 = vpop.f32.mrf.mxu2 }
 0x1fb   :  { %v835_v54 = vmax.f32 %v655_v43, %v771_v48  ;;  %v367_v55 = vadd.f32 %v2360_v44, %v366_v52  ;;  %v1072_v56 = vadd.f32 %v2266_v4, %v1071_v53  ;;  %v1431_v57 = vsel %vm1400_vm2, %v1346_v49, 0.0 }
 0x1fc   :  { %1432 = vadd.xlane.f32.xlu1 %v1431_v57  ;;  %v459_v52 = vmax.f32 %v375_v38, 0.0  ;;  %v460_v53 = vmax.f32 %v377_v39, 0.0 }
 0x1fd   :  { %v884_v60 = vpack.c.bf16 %v835_v54, %v834_v51  ;;  %v456_v61 = vmax.f32 %v367_v55, 0.0  ;;  %v1215_v62 = vmul.f32 0.01, %v1072_v56  ;;  %v2390_v51 = vpop.f32.mrf.mxu3 }
 0x1fe   :  { %v657_v63 = vpop.f32.mrf.mxu1 }
 0x1ff   :  { %v496_v0 = vpack.c.bf16 %v456_v61, %v455_v59  ;;  %v1279_v1 = vmax.f32 %v1072_v56, %v1215_v62  ;;  %1828 = vmatmul.msk.bf16.gmra.mxu2 %vm938_vm1, %v884_v60  ;;  %v658_v42 = vadd.f32 %v2134_v3, %v657_v63 }
 0x201   :  { %696 = vmatmul.bf16.vlgmr.msrb.gmra.mxu3 %v496_v0  ;;  %v1347_v2 = vmul.f32 %v2279_v47, %v1279_v1  ;;  %v772_v10 = vmul.f32 0.01, %v658_v42  ;;  %v498_v0 = vpack.c.bf16 %v460_v53, %v459_v52 }
 0x202   :  { %v369_v5 = vpop.f32.mrf.mxu0  ;;  %v1074_v46 = vpop.f32.mrf.mxu2 }
 0x203   :  { %v1075_v6 = vadd.f32 %v2266_v4, %v1074_v46  ;;  %v1434_v7 = vsel %vm1400_vm2, %v1347_v2, 0.0  ;;  %v370_v14 = vadd.f32 %v2360_v44, %v369_v5  ;;  %v836_v17 = vmax.f32 %v658_v42, %v772_v10 }
 0x204   :  { %1435 = vadd.xlane.f32.xlu2 %v1434_v7  ;;  %v380_v10 = vadd.f32 %v2360_v44, %v2372_v9 }
 0x205   :  { %v1216_v8 = vmul.f32 0.01, %v1075_v6  ;;  %v457_v23 = vmax.f32 %v370_v14, 0.0  ;;  %v386_v7 = vpop.f32.mrf.mxu3 }
 0x206   :  { %v659_v11 = vpop.f32.mrf.mxu1 }
 0x207   :  { %v1280_v12 = vmax.f32 %v1075_v6, %v1216_v8  ;;  %v660_v13 = vadd.f32 %v2134_v3, %v659_v11  ;;  %v382_v11 = vadd.f32 %v2360_v44, %v381_v30 }
 0x209   :  { %v773_v15 = vmul.f32 0.01, %v660_v13  ;;  %v1348_v16 = vmul.f32 %v2279_v47, %v1280_v12  ;;  %v462_v9 = vmax.f32 %v382_v11, 0.0 }
 0x20a   :  { %v371_v18 = vpop.f32.mrf.mxu0  ;;  %v1076_v19 = vpop.f32.mrf.mxu2 }
 0x20b   :  { %v837_v50 = vmax.f32 %v660_v13, %v773_v15  ;;  %v372_v20 = vadd.f32 %v2360_v44, %v371_v18  ;;  %v1077_v21 = vadd.f32 %v2266_v4, %v1076_v19  ;;  %v1437_v22 = vsel %vm1400_vm2, %v1348_v16, 0.0  ;;  %v2412_v15 = vld [vmem:[%s2943_s4] ss:$0 sm:$0xff] }
 0x20c   :  { %1438 = vadd.xlane.f32.xlu0 %v1437_v22 }
 0x20d   :  { %v885_v24 = vpack.c.bf16 %v837_v50, %v836_v17  ;;  %v458_v25 = vmax.f32 %v372_v20, 0.0  ;;  %v1217_v26 = vmul.f32 0.01, %v1077_v21  ;;  %v461_v50 = vmax.f32 %v380_v10, 0.0 }
 0x20e   :  { %v662_v27 = vpop.f32.mrf.mxu1 }
 0x20f   :  { %v1281_v28 = vmax.f32 %v1077_v21, %v1217_v26  ;;  %1829 = vmatmul.msk.bf16.gmra.mxu2 %vm938_vm1, %v885_v24  ;;  %v497_v29 = vpack.c.bf16 %v458_v25, %v457_v23  ;;  %v663_v33 = vadd.f32 %v2134_v3, %v662_v27  ;;  %v389_v27 = vpop.f32.mrf.mxu3 }
 0x211   :  { %701 = vmatmul.bf16.gmra.mxu3 %v497_v29  ;;  %v1349_v37 = vmul.f32 %v2279_v47, %v1281_v28  ;;  %v774_v41 = vmul.f32 0.01, %v663_v33 }
 0x212   :  { %v1079_v32 = vpop.f32.mrf.mxu2 }
 0x213   :  { %v1080_v34 = vadd.f32 %v2266_v4, %v1079_v32  ;;  %v1440_v35 = vsel %vm1400_vm2, %v1349_v37, 0.0  ;;  %v838_v55 = vmax.f32 %v663_v33, %v774_v41  ;;  %v499_v37 = vpack.c.bf16 %v462_v9, %v461_v50 }
 0x214   :  { %1441 = vadd.xlane.f32.xlu1 %v1440_v35  ;;  %v387_v41 = vadd.f32 %v2360_v44, %v386_v7 }
 0x215   :  { %v1218_v36 = vmul.f32 0.01, %v1080_v34 }
 0x216   :  { %v664_v40 = vpop.f32.mrf.mxu1 }
 0x217   :  { %v1282_v43 = vmax.f32 %v1080_v34, %v1218_v36  ;;  %v665_v45 = vadd.f32 %v2134_v3, %v664_v40  ;;  %v385_v40 = vadd.f32 %v2360_v44, %v2390_v51  ;;  %v391_v53 = vpop.f32.mrf.mxu3 }
 0x219   :  { %v775_v48 = vmul.f32 0.01, %v665_v45  ;;  %v1350_v49 = vmul.f32 %v2279_v47, %v1282_v43 }
 0x21a   :  { %v1081_v54 = vpop.f32.mrf.mxu2 }
 0x21b   :  { %v839_v56 = vmax.f32 %v665_v45, %v775_v48  ;;  %v1082_v57 = vadd.f32 %v2266_v4, %v1081_v54  ;;  %v1443_v31 = vsel %vm1400_vm2, %v1350_v49, 0.0 }
 0x21c   :  { %1444 = vadd.xlane.f32.xlu2 %v1443_v31  ;;  %v464_v31 = vmax.f32 %v387_v41, 0.0 }
 0x21d   :  { %v886_v59 = vpack.c.bf16 %v839_v56, %v838_v55  ;;  %v1219_v60 = vmul.f32 0.01, %v1082_v57 }
 0x21e   :  { %v667_v61 = vpop.f32.mrf.mxu1 }
 0x21f   :  { %v1283_v62 = vmax.f32 %v1082_v57, %v1219_v60  ;;  %1830 = vmatmul.msk.bf16.gmra.mxu2 %vm938_vm1, %v886_v59  ;;  %v1403_v63 = vpop.xlane.xlu0 %1402  ;;  %v668_v5 = vadd.f32 %v2134_v3, %v667_v61  ;;  %v463_v57 = vmax.f32 %v385_v40, 0.0  ;;  %v394_v7 = vpop.f32.mrf.mxu3 }
 0x220   :  { %v1597_v1 = vadd.f32 %v2394_v58, %v1403_v63 }
 0x221   :  { %706 = vmatmul.bf16.gmra.mxu3 %v498_v0  ;;  %v1351_v2 = vmul.f32 %v2279_v47, %v1283_v62  ;;  %v776_v13 = vmul.f32 0.01, %v668_v5 }
 0x222   :  { %1662 = vst.msk [vmem:[%s2948_s9] sm:$0xff] %vm1661_vm3, %v1597_v1  ;;  %v1084_v42 = vpop.f32.mrf.mxu2 }
 0x223   :  { %v1085_v46 = vadd.f32 %v2266_v4, %v1084_v42  ;;  %v1446_v6 = vsel %vm1400_vm2, %v1351_v2, 0.0  ;;  %v840_v21 = vmax.f32 %v668_v5, %v776_v13  ;;  %v500_v5 = vpack.c.bf16 %v464_v31, %v463_v57 }
 0x224   :  { %1447 = vadd.xlane.f32.xlu0 %v1446_v6 }
 0x225   :  { %v1220_v8 = vmul.f32 0.01, %v1085_v46 }
 0x226   :  { %v669_v12 = vpop.f32.mrf.mxu1 }
 0x227   :  { %v1284_v14 = vmax.f32 %v1085_v46, %v1220_v8  ;;  %v670_v3 = vadd.f32 %v2412_v15, %v669_v12  ;;  %v1406_v16 = vpop.xlane.xlu0 %1405 }
 0x228   :  { %v1598_v17 = vadd.f32 %v2394_v58, %v1406_v16 }
 0x229   :  { %v777_v18 = vmul.f32 0.01, %v670_v3  ;;  %v1352_v19 = vmul.f32 %v2279_v47, %v1284_v14  ;;  %v390_v14 = vadd.f32 %v2360_v44, %v389_v27 }
 0x22a   :  { %1663 = vst.msk [vmem:[%s2948_s9 + $0x8] sm:$0xff] %vm1661_vm3, %v1598_v17  ;;  %v1086_v20 = vpop.f32.mrf.mxu2 }
 0x22b   :  { %v841_v22 = vmax.f32 %v670_v3, %v777_v18  ;;  %v1087_v23 = vadd.f32 %v2266_v4, %v1086_v20  ;;  %v1449_v24 = vsel %vm1400_vm2, %v1352_v19, 0.0  ;;  %v392_v3 = vadd.f32 %v2360_v44, %v391_v53 }
 0x22c   :  { %1450 = vadd.xlane.f32.xlu1 %v1449_v24 }
 0x22d   :  { %v887_v25 = vpack.c.bf16 %v841_v22, %v840_v21  ;;  %v1221_v26 = vmul.f32 0.01, %v1087_v23  ;;  %v465_v22 = vmax.f32 %v390_v14, 0.0 }
 0x22e   :  { %v672_v28 = vpop.f32.mrf.mxu1 }
 0x22f   :  { %v1285_v29 = vmax.f32 %v1087_v23, %v1221_v26  ;;  %1831 = vmatmul.msk.bf16.gmra.mxu2 %vm938_vm1, %v887_v25  ;;  %v1409_v30 = vpop.xlane.xlu1 %1408  ;;  %v673_v35 = vadd.f32 %v2412_v15, %v672_v28  ;;  %v466_v23 = vmax.f32 %v392_v3, 0.0 }
 0x230   :  { %v1599_v32 = vadd.f32 %v2394_v58, %v1409_v30 }
 0x231   :  { %711 = vmatmul.bf16.gmra.mxu3 %v499_v37  ;;  %v1353_v33 = vmul.f32 %v2279_v47, %v1285_v29  ;;  %v778_v45 = vmul.f32 0.01, %v673_v35  ;;  %v396_v29 = vpop.f32.mrf.mxu3 }
 0x232   :  { %1664 = vst.msk [vmem:[%s2948_s9 + $0x10] sm:$0xff] %vm1661_vm3, %v1599_v32  ;;  %v1089_v34 = vpop.f32.mrf.mxu2 }
 0x233   :  { %v1090_v36 = vadd.f32 %v2266_v4, %v1089_v34  ;;  %v1452_v38 = vsel %vm1400_vm2, %v1353_v33, 0.0  ;;  %v842_v59 = vmax.f32 %v673_v35, %v778_v45  ;;  %v501_v35 = vpack.c.bf16 %v466_v23, %v465_v22 }
 0x234   :  { %1453 = vadd.xlane.f32.xlu2 %v1452_v38 }
 0x235   :  { %v1222_v39 = vmul.f32 0.01, %v1090_v36 }
 0x236   :  { %v674_v43 = vpop.f32.mrf.mxu1 }
 0x237   :  { %v1286_v48 = vmax.f32 %v1090_v36, %v1222_v39  ;;  %v675_v49 = vadd.f32 %v2412_v15, %v674_v43  ;;  %v1412_v52 = vpop.xlane.xlu1 %1411 }
 0x238   :  { %v1600_v54 = vadd.f32 %v2394_v58, %v1412_v52  ;;  %v397_v52 = vadd.f32 %v2360_v44, %v396_v29 }
 0x239   :  { %v779_v55 = vmul.f32 0.01, %v675_v49  ;;  %v1354_v56 = vmul.f32 %v2279_v47, %v1286_v48  ;;  %v399_v48 = vpop.f32.mrf.mxu3 }
 0x23a   :  { %1665 = vst.msk [vmem:[%s2948_s9 + $0x18] sm:$0xff] %vm1661_vm3, %v1600_v54  ;;  %v1091_v51 = vpop.f32.mrf.mxu2 }
 0x23b   :  { %v843_v60 = vmax.f32 %v675_v49, %v779_v55  ;;  %v1092_v61 = vadd.f32 %v2266_v4, %v1091_v51  ;;  %v1455_v62 = vsel %vm1400_vm2, %v1354_v56, 0.0  ;;  %v395_v49 = vadd.f32 %v2360_v44, %v394_v7 }
 0x23c   :  { %1456 = vadd.xlane.f32.xlu0 %v1455_v62 }
 0x23d   :  { %v888_v63 = vpack.c.bf16 %v843_v60, %v842_v59  ;;  %v1223_v0 = vmul.f32 0.01, %v1092_v61  ;;  %v467_v60 = vmax.f32 %v395_v49, 0.0 }
 0x23e   :  { %v677_v1 = vpop.f32.mrf.mxu1 }
 0x23f   :  { %v1287_v2 = vmax.f32 %v1092_v61, %v1223_v0  ;;  %1832 = vmatmul.msk.bf16.gmra.mxu2 %vm938_vm1, %v888_v63  ;;  %v1415_v42 = vpop.xlane.xlu2 %1414  ;;  %v678_v10 = vadd.f32 %v2412_v15, %v677_v1  ;;  %v468_v61 = vmax.f32 %v397_v52, 0.0 }
 0x240   :  { %v1601_v46 = vadd.f32 %v2394_v58, %v1415_v42 }
 0x241   :  { %716 = vmatmul.bf16.gmra.mxu3 %v500_v5  ;;  %v1355_v6 = vmul.f32 %v2279_v47, %v1287_v2  ;;  %v780_v17 = vmul.f32 0.01, %v678_v10 }
 0x242   :  { %1666 = vst.msk [vmem:[%s2948_s9 + $0x20] sm:$0xff] %vm1661_vm3, %v1601_v46  ;;  %v1094_v8 = vpop.f32.mrf.mxu2 }
 0x243   :  { %v1095_v11 = vadd.f32 %v2266_v4, %v1094_v8  ;;  %v1458_v12 = vsel %vm1400_vm2, %v1355_v6, 0.0  ;;  %v844_v25 = vmax.f32 %v678_v10, %v780_v17  ;;  %v502_v8 = vpack.c.bf16 %v468_v61, %v467_v60  ;;  %v401_v10 = vpop.f32.mrf.mxu3 }
 0x244   :  { %1459 = vadd.xlane.f32.xlu1 %v1458_v12 }
 0x245   :  { %v1224_v13 = vmul.f32 0.01, %v1095_v11 }
 0x246   :  { %v679_v16 = vpop.f32.mrf.mxu1 }
 0x247   :  { %v1288_v18 = vmax.f32 %v1095_v11, %v1224_v13  ;;  %v680_v19 = vadd.f32 %v2412_v15, %v679_v16  ;;  %v1418_v50 = vpop.xlane.xlu2 %1417 }
 0x248   :  { %v1602_v9 = vadd.f32 %v2394_v58, %v1418_v50 }
 0x249   :  { %v781_v20 = vmul.f32 0.01, %v680_v19  ;;  %v1356_v21 = vmul.f32 %v2279_v47, %v1288_v18  ;;  %v400_v18 = vadd.f32 %v2360_v44, %v399_v48 }
 0x24a   :  { %1667 = vst.msk [vmem:[%s2948_s9 + $0x28] sm:$0xff] %vm1661_vm3, %v1602_v9  ;;  %v1096_v24 = vpop.f32.mrf.mxu2 }
 0x24b   :  { %v845_v26 = vmax.f32 %v680_v19, %v781_v20  ;;  %v1097_v27 = vadd.f32 %v2266_v4, %v1096_v24  ;;  %v1461_v28 = vsel %vm1400_vm2, %v1356_v21, 0.0  ;;  %v402_v19 = vadd.f32 %v2360_v44, %v401_v10 }
 0x24c   :  { %1462 = vadd.xlane.f32.xlu2 %v1461_v28 }
 0x24d   :  { %v889_v30 = vpack.c.bf16 %v845_v26, %v844_v25  ;;  %v1225_v37 = vmul.f32 0.01, %v1097_v27  ;;  %v404_v25 = vpop.f32.mrf.mxu3  ;;  %v470_v28 = vmax.f32 %v402_v19, 0.0 }
 0x24e   :  { %v682_v32 = vpop.f32.mrf.mxu1 }
 0x24f   :  { %v1289_v33 = vmax.f32 %v1097_v27, %v1225_v37  ;;  %1833 = vmatmul.msk.bf16.gmra.mxu2 %vm938_vm1, %v889_v30  ;;  %v1421_v34 = vpop.xlane.xlu0 %1420  ;;  %v683_v40 = vadd.f32 %v2412_v15, %v682_v32  ;;  %v469_v27 = vmax.f32 %v400_v18, 0.0 }
 0x250   :  { %v1603_v36 = vadd.f32 %v2394_v58, %v1421_v34 }
 0x251   :  { %721 = vmatmul.bf16.gmra.mxu3 %v501_v35  ;;  %v1357_v38 = vmul.f32 %v2279_v47, %v1289_v33  ;;  %v782_v54 = vmul.f32 0.01, %v683_v40 }
 0x252   :  { %1668 = vst.msk [vmem:[%s2948_s9 + $0x30] sm:$0xff] %vm1661_vm3, %v1603_v36  ;;  %v1099_v39 = vpop.f32.mrf.mxu2 }
 0x253   :  { %v1100_v41 = vadd.f32 %v2266_v4, %v1099_v39  ;;  %v1464_v43 = vsel %vm1400_vm2, %v1357_v38, 0.0  ;;  %v846_v63 = vmax.f32 %v683_v40, %v782_v54  ;;  %v503_v40 = vpack.c.bf16 %v470_v28, %v469_v27 }
 0x254   :  { %1465 = vadd.xlane.f32.xlu0 %v1464_v43 }
 0x255   :  { %v1226_v45 = vmul.f32 0.01, %v1100_v41  ;;  %v406_v49 = vpop.f32.mrf.mxu3 }
 0x256   :  { %v684_v53 = vpop.f32.mrf.mxu1 }
 0x257   :  { %v1290_v55 = vmax.f32 %v1100_v41, %v1226_v45  ;;  %v685_v56 = vadd.f32 %v2412_v15, %v684_v53  ;;  %v1424_v57 = vpop.xlane.xlu1 %1423 }
 0x258   :  { %v1604_v31 = vadd.f32 %v2394_v58, %v1424_v57 }
 0x259   :  { %v783_v51 = vmul.f32 0.01, %v685_v56  ;;  %v1358_v59 = vmul.f32 %v2279_v47, %v1290_v55  ;;  %v405_v55 = vadd.f32 %v2360_v44, %v404_v25 }
 0x25a   :  { %1669 = vst.msk [vmem:[%s2948_s9 + $0x38] sm:$0xff] %vm1661_vm3, %v1604_v31  ;;  %v1101_v62 = vpop.f32.mrf.mxu2 }
 0x25b   :  { %v847_v0 = vmax.f32 %v685_v56, %v783_v51  ;;  %v1102_v1 = vadd.f32 %v2266_v4, %v1101_v62  ;;  %v1467_v2 = vsel %vm1400_vm2, %v1358_v59, 0.0  ;;  %v407_v56 = vadd.f32 %v2360_v44, %v406_v49 }
 0x25c   :  { %1468 = vadd.xlane.f32.xlu1 %v1467_v2 }
 0x25d   :  { %v890_v42 = vpack.c.bf16 %v847_v0, %v846_v63  ;;  %v1227_v5 = vmul.f32 0.01, %v1102_v1  ;;  %v471_v0 = vmax.f32 %v405_v55, 0.0 }
 0x25e   :  { %v687_v46 = vpop.f32.mrf.mxu1 }
 0x25f   :  { %v1291_v6 = vmax.f32 %v1102_v1, %v1227_v5  ;;  %1834 = vmatmul.msk.bf16.gmra.mxu2 %vm938_vm1, %v890_v42  ;;  %v1427_v7 = vpop.xlane.xlu2 %1426  ;;  %v688_v14 = vadd.f32 %v2412_v15, %v687_v46  ;;  %v472_v1 = vmax.f32 %v407_v56, 0.0 }
 0x260   :  { %v1605_v11 = vadd.f32 %v2394_v58, %v1427_v7 }
 0x261   :  { %726 = vmatmul.bf16.gmra.mxu3 %v502_v8  ;;  %v1359_v12 = vmul.f32 %v2279_v47, %v1291_v6  ;;  %v784_v9 = vmul.f32 0.01, %v688_v14 }
 0x262   :  { %1670 = vst.msk [vmem:[%s2948_s9 + $0x40] sm:$0xff] %vm1661_vm3, %v1605_v11  ;;  %v1104_v13 = vpop.f32.mrf.mxu2  ;;  %v504_v11 = vpack.c.bf16 %v472_v1, %v471_v0 }
 0x263   :  { %v1105_v3 = vadd.f32 %v2266_v4, %v1104_v13  ;;  %v1470_v16 = vsel %vm1400_vm2, %v1359_v12, 0.0  ;;  %v848_v30 = vmax.f32 %v688_v14, %v784_v9 }
 0x264   :  { %1471 = vadd.xlane.f32.xlu2 %v1470_v16 }
 0x265   :  { %v1228_v17 = vmul.f32 0.01, %v1105_v3 }
 0x266   :  { %v689_v50 = vpop.f32.mrf.mxu1 }
 0x267   :  { %v1292_v20 = vmax.f32 %v1105_v3, %v1228_v17  ;;  %v690_v21 = vadd.f32 %v2412_v15, %v689_v50  ;;  %v1430_v22 = vpop.xlane.xlu0 %1429 }
 0x268   :  { %v1606_v23 = vadd.f32 %v2394_v58, %v1430_v22 }
 0x269   :  { %v785_v24 = vmul.f32 0.01, %v690_v21  ;;  %v1360_v26 = vmul.f32 %v2279_v47, %v1292_v20 }
 0x26a   :  { %1671 = vst.msk [vmem:[%s2948_s9 + $0x48] sm:$0xff] %vm1661_vm3, %v1606_v23  ;;  %v1106_v29 = vpop.f32.mrf.mxu2 }
 0x26b   :  { %v849_v37 = vmax.f32 %v690_v21, %v785_v24  ;;  %v1107_v32 = vadd.f32 %v2266_v4, %v1106_v29  ;;  %v1473_v33 = vsel %vm1400_vm2, %v1360_v26, 0.0 }
 0x26c   :  { %1474 = vadd.xlane.f32.xlu0 %v1473_v33 }
 0x26d   :  { %v891_v34 = vpack.c.bf16 %v849_v37, %v848_v30  ;;  %v1229_v35 = vmul.f32 0.01, %v1107_v32 }
 0x26e   :  { %v692_v36 = vpop.f32.mrf.mxu1 }
 0x26f   :  { %v1293_v38 = vmax.f32 %v1107_v32, %v1229_v35  ;;  %1835 = vmatmul.msk.bf16.gmra.mxu2 %vm938_vm1, %v891_v34  ;;  %v1433_v39 = vpop.xlane.xlu1 %1432  ;;  %v693_v48 = vadd.f32 %v2412_v15, %v692_v36  ;;  %v2557_v34 = vld [vmem:[%s2946_s7] ss:$0 sm:$0xff] }
 0x270   :  { %v1607_v41 = vadd.f32 %v2394_v58, %v1433_v39 }
 0x271   :  { %731 = vmatmul.bf16.gmra.mxu3 %v503_v40  ;;  %v1361_v43 = vmul.f32 %v2279_v47, %v1293_v38  ;;  %v786_v31 = vmul.f32 0.01, %v693_v48 }
 0x272   :  { %1672 = vst.msk [vmem:[%s2948_s9 + $0x50] sm:$0xff] %vm1661_vm3, %v1607_v41  ;;  %v1109_v45 = vpop.f32.mrf.mxu2 }
 0x273   :  { %v1110_v52 = vadd.f32 %v2266_v4, %v1109_v45  ;;  %v1476_v53 = vsel %vm1400_vm2, %v1361_v43, 0.0  ;;  %v850_v44 = vmax.f32 %v693_v48, %v786_v31 }
 0x274   :  { %1477 = vadd.xlane.f32.xlu1 %v1476_v53 }
 0x275   :  { %v1230_v54 = vmul.f32 0.01, %v1110_v52 }
 0x276   :  { %v694_v57 = vpop.f32.mrf.mxu1 }
 0x277   :  { %v1294_v51 = vmax.f32 %v1110_v52, %v1230_v54  ;;  %v695_v59 = vadd.f32 %v2412_v15, %v694_v57  ;;  %v1436_v60 = vpop.xlane.xlu2 %1435 }
 0x278   :  { %v1608_v61 = vadd.f32 %v2394_v58, %v1436_v60 }
 0x279   :  { %v787_v62 = vmul.f32 0.01, %v695_v59  ;;  %v1362_v63 = vmul.f32 %v2279_v47, %v1294_v51 }
 0x27a   :  { %1673 = vst.msk [vmem:[%s2948_s9 + $0x58] sm:$0xff] %vm1661_vm3, %v1608_v61  ;;  %v1111_v2 = vpop.f32.mrf.mxu2 }
 0x27b   :  { %v851_v42 = vmax.f32 %v695_v59, %v787_v62  ;;  %v1112_v5 = vadd.f32 %v2266_v4, %v1111_v2  ;;  %v1479_v46 = vsel %vm1400_vm2, %v1362_v63, 0.0 }
 0x27c   :  { %1480 = vadd.xlane.f32.xlu2 %v1479_v46 }
 0x27d   :  { %v892_v6 = vpack.c.bf16 %v851_v42, %v850_v44  ;;  %v1231_v7 = vmul.f32 0.01, %v1112_v5 }
 0x27f   :  { %v1295_v8 = vmax.f32 %v1112_v5, %v1231_v7  ;;  %1836 = vmatmul.msk.bf16.gmra.mxu2 %vm938_vm1, %v892_v6  ;;  %v1439_v10 = vpop.xlane.xlu0 %1438 }
 0x280   :  { %v1609_v12 = vadd.f32 %v2394_v58, %v1439_v10 }
 0x281   :  { %736 = vmatmul.bf16.gmra.mxu3 %v504_v11  ;;  %v1363_v13 = vmul.f32 %v2279_v47, %v1295_v8 }
 0x282   :  { %1674 = vst.msk [vmem:[%s2948_s9 + $0x60] sm:$0xff] %vm1661_vm3, %v1609_v12  ;;  %v1114_v14 = vpop.f32.mrf.mxu2 }
 0x283   :  { %v1115_v3 = vadd.f32 %v2266_v4, %v1114_v14  ;;  %v1482_v16 = vsel %vm1400_vm2, %v1363_v13, 0.0  ;;  %v2548_v4 = vld [vmem:[%s2945_s6] ss:$0 sm:$0xff] }
 0x284   :  { %v697_v17 = vpop.f32.mrf.mxu3  ;;  %1483 = vadd.xlane.f32.xlu0 %v1482_v16 }
 0x285   :  { %v1232_v18 = vmul.f32 0.01, %v1115_v3  ;;  %v698_v20 = vadd.f32 %v2412_v15, %v697_v17 }
 0x287   :  { %v1296_v19 = vmax.f32 %v1115_v3, %v1232_v18  ;;  %v1442_v50 = vpop.xlane.xlu1 %1441  ;;  %v788_v26 = vmul.f32 0.01, %v698_v20 }
 0x288   :  { %v1610_v9 = vadd.f32 %v2394_v58, %v1442_v50 }
 0x289   :  { %v1364_v21 = vmul.f32 %v2279_v47, %v1296_v19  ;;  %v852_v32 = vmax.f32 %v698_v20, %v788_v26 }
 0x28a   :  { %1675 = vst.msk [vmem:[%s2948_s9 + $0x68] sm:$0xff] %vm1661_vm3, %v1610_v9  ;;  %v1116_v22 = vpop.f32.mrf.mxu2 }
 0x28b   :  { %v1117_v23 = vadd.f32 %v2548_v4, %v1116_v22  ;;  %v1485_v24 = vsel %vm1400_vm2, %v1364_v21, 0.0 }
 0x28c   :  { %v699_v25 = vpop.f32.mrf.mxu3  ;;  %1486 = vadd.xlane.f32.xlu1 %v1485_v24 }
 0x28d   :  { %v1233_v27 = vmul.f32 0.01, %v1117_v23  ;;  %v700_v47 = vadd.f32 %v2412_v15, %v699_v25 }
 0x28f   :  { %v1297_v28 = vmax.f32 %v1117_v23, %v1233_v27  ;;  %v789_v29 = vmul.f32 0.01, %v700_v47  ;;  %v1445_v30 = vpop.xlane.xlu2 %1444 }
 0x290   :  { %v1611_v37 = vadd.f32 %v2394_v58, %v1445_v30 }
 0x291   :  { %v853_v33 = vmax.f32 %v700_v47, %v789_v29  ;;  %v1365_v35 = vmul.f32 %v2557_v34, %v1297_v28 }
 0x292   :  { %1676 = vst.msk [vmem:[%s2948_s9 + $0x70] sm:$0xff] %vm1661_vm3, %v1611_v37  ;;  %v1119_v36 = vpop.f32.mrf.mxu2 }
 0x293   :  { %v893_v38 = vpack.c.bf16 %v853_v33, %v852_v32  ;;  %v1120_v39 = vadd.f32 %v2548_v4, %v1119_v36  ;;  %v1488_v40 = vsel %vm1400_vm2, %v1365_v35, 0.0 }
 0x294   :  { %v702_v41 = vpop.f32.mrf.mxu3  ;;  %1489 = vadd.xlane.f32.xlu2 %v1488_v40 }
 0x295   :  { %v1234_v43 = vmul.f32 0.01, %v1120_v39  ;;  %1837 = vmatmul.msk.bf16.gmra.mxu2 %vm938_vm1, %v893_v38  ;;  %v703_v52 = vadd.f32 %v2412_v15, %v702_v41 }
 0x297   :  { %v1298_v45 = vmax.f32 %v1120_v39, %v1234_v43  ;;  %v1448_v48 = vpop.xlane.xlu0 %1447  ;;  %v790_v31 = vmul.f32 0.01, %v703_v52 }
 0x298   :  { %v1612_v49 = vadd.f32 %v2394_v58, %v1448_v48 }
 0x299   :  { %v1366_v53 = vmul.f32 %v2557_v34, %v1298_v45  ;;  %v854_v0 = vmax.f32 %v703_v52, %v790_v31 }
 0x29a   :  { %1677 = vst.msk [vmem:[%s2948_s9 + $0x78] sm:$0xff] %vm1661_vm3, %v1612_v49  ;;  %v1121_v54 = vpop.f32.mrf.mxu2 }
 0x29b   :  { %v1122_v55 = vadd.f32 %v2548_v4, %v1121_v54  ;;  %v1491_v56 = vsel %vm1400_vm2, %v1366_v53, 0.0 }
 0x29c   :  { %v704_v57 = vpop.f32.mrf.mxu3  ;;  %1492 = vadd.xlane.f32.xlu0 %v1491_v56 }
 0x29d   :  { %v1235_v51 = vmul.f32 0.01, %v1122_v55  ;;  %v705_v59 = vadd.f32 %v2412_v15, %v704_v57 }
 0x29f   :  { %v1299_v60 = vmax.f32 %v1122_v55, %v1235_v51  ;;  %v791_v61 = vmul.f32 0.01, %v705_v59  ;;  %v1451_v62 = vpop.xlane.xlu1 %1450 }
 0x2a0   :  { %v1613_v63 = vadd.f32 %v2394_v58, %v1451_v62 }
 0x2a1   :  { %v855_v1 = vmax.f32 %v705_v59, %v791_v61  ;;  %v1367_v2 = vmul.f32 %v2557_v34, %v1299_v60 }
 0x2a2   :  { %1678 = vst.msk [vmem:[%s2948_s9 + $0x80] sm:$0xff] %vm1661_vm3, %v1613_v63  ;;  %v1124_v44 = vpop.f32.mrf.mxu2 }
 0x2a3   :  { %v894_v42 = vpack.c.bf16 %v855_v1, %v854_v0  ;;  %v1125_v5 = vadd.f32 %v2548_v4, %v1124_v44  ;;  %v1494_v46 = vsel %vm1400_vm2, %v1367_v2, 0.0 }
 0x2a4   :  { %v707_v6 = vpop.f32.mrf.mxu3  ;;  %1495 = vadd.xlane.f32.xlu1 %v1494_v46 }
 0x2a5   :  { %v1236_v7 = vmul.f32 0.01, %v1125_v5  ;;  %1838 = vmatmul.msk.bf16.vlgmr.msra.gmra.mxu3 %vm938_vm1, %v894_v42  ;;  %v708_v12 = vadd.f32 %v2412_v15, %v707_v6 }
 0x2a7   :  { %v1300_v8 = vmax.f32 %v1125_v5, %v1236_v7  ;;  %v1454_v10 = vpop.xlane.xlu2 %1453  ;;  %v792_v18 = vmul.f32 0.01, %v708_v12 }
 0x2a8   :  { %v1614_v11 = vadd.f32 %v2394_v58, %v1454_v10 }
 0x2a9   :  { %v1368_v13 = vmul.f32 %v2557_v34, %v1300_v8  ;;  %v856_v23 = vmax.f32 %v708_v12, %v792_v18 }
 0x2aa   :  { %1679 = vst.msk [vmem:[%s2948_s9 + $0x88] sm:$0xff] %vm1661_vm3, %v1614_v11  ;;  %v1126_v14 = vpop.f32.mrf.mxu2 }
 0x2ab   :  { %v1127_v3 = vadd.f32 %v2548_v4, %v1126_v14  ;;  %v1497_v16 = vsel %vm1400_vm2, %v1368_v13, 0.0 }
 0x2ac   :  { %v709_v17 = vpop.f32.mrf.mxu3  ;;  %1498 = vadd.xlane.f32.xlu2 %v1497_v16 }
 0x2ad   :  { %v1237_v19 = vmul.f32 0.01, %v1127_v3  ;;  %v710_v50 = vadd.f32 %v2412_v15, %v709_v17 }
 0x2af   :  { %v1301_v9 = vmax.f32 %v1127_v3, %v1237_v19  ;;  %v793_v20 = vmul.f32 0.01, %v710_v50  ;;  %v1457_v21 = vpop.xlane.xlu0 %1456 }
 0x2b0   :  { %v1615_v22 = vadd.f32 %v2394_v58, %v1457_v21 }
 0x2b1   :  { %v857_v24 = vmax.f32 %v710_v50, %v793_v20  ;;  %v1369_v25 = vmul.f32 %v2557_v34, %v1301_v9 }
 0x2b2   :  { %1680 = vst.msk [vmem:[%s2948_s9 + $0x90] sm:$0xff] %vm1661_vm3, %v1615_v22  ;;  %v1129_v26 = vpop.f32.mrf.mxu2 }
 0x2b3   :  { %v895_v27 = vpack.c.bf16 %v857_v24, %v856_v23  ;;  %v1130_v47 = vadd.f32 %v2548_v4, %v1129_v26  ;;  %v1500_v28 = vsel %vm1400_vm2, %v1369_v25, 0.0 }
 0x2b4   :  { %v712_v29 = vpop.f32.mrf.mxu3  ;;  %1501 = vadd.xlane.f32.xlu0 %v1500_v28 }
 0x2b5   :  { %v1238_v30 = vmul.f32 0.01, %v1130_v47  ;;  %1839 = vmatmul.msk.bf16.gmra.mxu3 %vm938_vm1, %v895_v27  ;;  %v713_v35 = vadd.f32 %v2412_v15, %v712_v29 }
 0x2b7   :  { %v1302_v37 = vmax.f32 %v1130_v47, %v1238_v30  ;;  %v1460_v32 = vpop.xlane.xlu1 %1459  ;;  %v794_v43 = vmul.f32 0.01, %v713_v35 }
 0x2b8   :  { %v1616_v33 = vadd.f32 %v2394_v58, %v1460_v32 }
 0x2b9   :  { %v1370_v36 = vmul.f32 %v2557_v34, %v1302_v37  ;;  %v858_v55 = vmax.f32 %v713_v35, %v794_v43 }
 0x2ba   :  { %1681 = vst.msk [vmem:[%s2948_s9 + $0x98] sm:$0xff] %vm1661_vm3, %v1616_v33  ;;  %v1131_v38 = vpop.f32.mrf.mxu2 }
 0x2bb   :  { %v1132_v39 = vadd.f32 %v2548_v4, %v1131_v38  ;;  %v1503_v40 = vsel %vm1400_vm2, %v1370_v36, 0.0 }
 0x2bc   :  { %v714_v41 = vpop.f32.mrf.mxu3  ;;  %1504 = vadd.xlane.f32.xlu1 %v1503_v40 }
 0x2bd   :  { %v1239_v45 = vmul.f32 0.01, %v1132_v39  ;;  %v715_v48 = vadd.f32 %v2412_v15, %v714_v41 }
 0x2bf   :  { %v1303_v49 = vmax.f32 %v1132_v39, %v1239_v45  ;;  %v795_v52 = vmul.f32 0.01, %v715_v48  ;;  %v1463_v53 = vpop.xlane.xlu2 %1462 }
 0x2c0   :  { %v1617_v54 = vadd.f32 %v2394_v58, %v1463_v53 }
 0x2c1   :  { %v859_v56 = vmax.f32 %v715_v48, %v795_v52  ;;  %v1371_v57 = vmul.f32 %v2557_v34, %v1303_v49 }
 0x2c2   :  { %1682 = vst.msk [vmem:[%s2948_s9 + $0xa0] sm:$0xff] %vm1661_vm3, %v1617_v54  ;;  %v1134_v31 = vpop.f32.mrf.mxu2 }
 0x2c3   :  { %v896_v51 = vpack.c.bf16 %v859_v56, %v858_v55  ;;  %v1135_v59 = vadd.f32 %v2548_v4, %v1134_v31  ;;  %v1506_v60 = vsel %vm1400_vm2, %v1371_v57, 0.0 }
 0x2c4   :  { %v717_v61 = vpop.f32.mrf.mxu3  ;;  %1507 = vadd.xlane.f32.xlu2 %v1506_v60 }
 0x2c5   :  { %v1240_v62 = vmul.f32 0.01, %v1135_v59  ;;  %1840 = vmatmul.msk.bf16.gmra.mxu3 %vm938_vm1, %v896_v51  ;;  %v718_v2 = vadd.f32 %v2412_v15, %v717_v61 }
 0x2c7   :  { %v1304_v63 = vmax.f32 %v1135_v59, %v1240_v62  ;;  %v1466_v0 = vpop.xlane.xlu0 %1465  ;;  %v796_v7 = vmul.f32 0.01, %v718_v2 }
 0x2c8   :  { %v1618_v1 = vadd.f32 %v2394_v58, %v1466_v0 }
 0x2c9   :  { %v1372_v44 = vmul.f32 %v2557_v34, %v1304_v63  ;;  %v860_v3 = vmax.f32 %v718_v2, %v796_v7 }
 0x2ca   :  { %1683 = vst.msk [vmem:[%s2948_s9 + $0xa8] sm:$0xff] %vm1661_vm3, %v1618_v1  ;;  %v1136_v42 = vpop.f32.mrf.mxu2 }
 0x2cb   :  { %v1137_v5 = vadd.f32 %v2548_v4, %v1136_v42  ;;  %v1509_v46 = vsel %vm1400_vm2, %v1372_v44, 0.0 }
 0x2cc   :  { %v719_v6 = vpop.f32.mrf.mxu3  ;;  %1510 = vadd.xlane.f32.xlu0 %v1509_v46 }
 0x2cd   :  { %v1241_v8 = vmul.f32 0.01, %v1137_v5  ;;  %v720_v10 = vadd.f32 %v2412_v15, %v719_v6 }
 0x2cf   :  { %v1305_v11 = vmax.f32 %v1137_v5, %v1241_v8  ;;  %v797_v12 = vmul.f32 0.01, %v720_v10  ;;  %v1469_v13 = vpop.xlane.xlu1 %1468 }
 0x2d0   :  { %v1619_v14 = vadd.f32 %v2394_v58, %v1469_v13 }
 0x2d1   :  { %v861_v16 = vmax.f32 %v720_v10, %v797_v12  ;;  %v1373_v17 = vmul.f32 %v2557_v34, %v1305_v11 }
 0x2d2   :  { %1684 = vst.msk [vmem:[%s2948_s9 + $0xb0] sm:$0xff] %vm1661_vm3, %v1619_v14  ;;  %v1139_v18 = vpop.f32.mrf.mxu2 }
 0x2d3   :  { %v897_v19 = vpack.c.bf16 %v861_v16, %v860_v3  ;;  %v1140_v50 = vadd.f32 %v2548_v4, %v1139_v18  ;;  %v1512_v9 = vsel %vm1400_vm2, %v1373_v17, 0.0 }
 0x2d4   :  { %v722_v20 = vpop.f32.mrf.mxu3  ;;  %1513 = vadd.xlane.f32.xlu1 %v1512_v9 }
 0x2d5   :  { %v1242_v21 = vmul.f32 0.01, %v1140_v50  ;;  %1841 = vmatmul.msk.bf16.gmra.mxu3 %vm938_vm1, %v897_v19  ;;  %v723_v25 = vadd.f32 %v2412_v15, %v722_v20 }
 0x2d7   :  { %v1306_v22 = vmax.f32 %v1140_v50, %v1242_v21  ;;  %v1472_v23 = vpop.xlane.xlu2 %1471  ;;  %v798_v30 = vmul.f32 0.01, %v723_v25 }
 0x2d8   :  { %v1620_v24 = vadd.f32 %v2394_v58, %v1472_v23 }
 0x2d9   :  { %v1374_v26 = vmul.f32 %v2557_v34, %v1306_v22  ;;  %v862_v39 = vmax.f32 %v723_v25, %v798_v30 }
 0x2da   :  { %1685 = vst.msk [vmem:[%s2948_s9 + $0xb8] sm:$0xff] %vm1661_vm3, %v1620_v24  ;;  %v1141_v27 = vpop.f32.mrf.mxu2 }
 0x2db   :  { %v1142_v47 = vadd.f32 %v2548_v4, %v1141_v27  ;;  %v1515_v28 = vsel %vm1400_vm2, %v1374_v26, 0.0 }
 0x2dc   :  { %v724_v29 = vpop.f32.mrf.mxu3  ;;  %1516 = vadd.xlane.f32.xlu2 %v1515_v28 }
 0x2dd   :  { %v1243_v37 = vmul.f32 0.01, %v1142_v47  ;;  %v725_v32 = vadd.f32 %v2412_v15, %v724_v29 }
 0x2df   :  { %v1307_v33 = vmax.f32 %v1142_v47, %v1243_v37  ;;  %v799_v35 = vmul.f32 0.01, %v725_v32  ;;  %v1475_v36 = vpop.xlane.xlu0 %1474 }
 0x2e0   :  { %v1621_v38 = vadd.f32 %v2394_v58, %v1475_v36 }
 0x2e1   :  { %v863_v40 = vmax.f32 %v725_v32, %v799_v35  ;;  %v1375_v41 = vmul.f32 %v2557_v34, %v1307_v33 }
 0x2e2   :  { %1686 = vst.msk [vmem:[%s2948_s9 + $0xc0] sm:$0xff] %vm1661_vm3, %v1621_v38  ;;  %v1144_v43 = vpop.f32.mrf.mxu2 }
 0x2e3   :  { %v898_v45 = vpack.c.bf16 %v863_v40, %v862_v39  ;;  %v1145_v48 = vadd.f32 %v2548_v4, %v1144_v43  ;;  %v1518_v49 = vsel %vm1400_vm2, %v1375_v41, 0.0 }
 0x2e4   :  { %v727_v52 = vpop.f32.mrf.mxu3  ;;  %1519 = vadd.xlane.f32.xlu0 %v1518_v49 }
 0x2e5   :  { %v1244_v53 = vmul.f32 0.01, %v1145_v48  ;;  %1842 = vmatmul.msk.bf16.gmra.mxu3 %vm938_vm1, %v898_v45  ;;  %v728_v57 = vadd.f32 %v2412_v15, %v727_v52 }
 0x2e7   :  { %v1308_v54 = vmax.f32 %v1145_v48, %v1244_v53  ;;  %v1478_v55 = vpop.xlane.xlu1 %1477  ;;  %v800_v62 = vmul.f32 0.01, %v728_v57 }
 0x2e8   :  { %v1622_v56 = vadd.f32 %v2394_v58, %v1478_v55 }
 0x2e9   :  { %v1376_v31 = vmul.f32 %v2557_v34, %v1308_v54  ;;  %v864_v5 = vmax.f32 %v728_v57, %v800_v62 }
 0x2ea   :  { %1687 = vst.msk [vmem:[%s2948_s9 + $0xc8] sm:$0xff] %vm1661_vm3, %v1622_v56  ;;  %v1146_v51 = vpop.f32.mrf.mxu2 }
 0x2eb   :  { %v1147_v59 = vadd.f32 %v2548_v4, %v1146_v51  ;;  %v1521_v60 = vsel %vm1400_vm2, %v1376_v31, 0.0 }
 0x2ec   :  { %v729_v61 = vpop.f32.mrf.mxu3  ;;  %1522 = vadd.xlane.f32.xlu1 %v1521_v60 }
 0x2ed   :  { %v1245_v63 = vmul.f32 0.01, %v1147_v59  ;;  %v730_v0 = vadd.f32 %v2412_v15, %v729_v61 }
 0x2ef   :  { %v1309_v1 = vmax.f32 %v1147_v59, %v1245_v63  ;;  %v801_v2 = vmul.f32 0.01, %v730_v0  ;;  %v1481_v44 = vpop.xlane.xlu2 %1480 }
 0x2f0   :  { %v1623_v42 = vadd.f32 %v2394_v58, %v1481_v44 }
 0x2f1   :  { %v865_v46 = vmax.f32 %v730_v0, %v801_v2  ;;  %v1377_v6 = vmul.f32 %v2557_v34, %v1309_v1 }
 0x2f2   :  { %1688 = vst.msk [vmem:[%s2948_s9 + $0xd0] sm:$0xff] %vm1661_vm3, %v1623_v42  ;;  %v1149_v7 = vpop.f32.mrf.mxu2 }
 0x2f3   :  { %v899_v8 = vpack.c.bf16 %v865_v46, %v864_v5  ;;  %v1150_v10 = vadd.f32 %v2548_v4, %v1149_v7  ;;  %v1524_v11 = vsel %vm1400_vm2, %v1377_v6, 0.0  ;;  %v2725_v6 = vld [vmem:[#allocation2] ss:$0 sm:$0xff] }
 0x2f4   :  { %v732_v12 = vpop.f32.mrf.mxu3  ;;  %1525 = vadd.xlane.f32.xlu2 %v1524_v11 }
 0x2f5   :  { %v1246_v13 = vmul.f32 0.01, %v1150_v10  ;;  %1843 = vmatmul.msk.bf16.gmra.mxu3 %vm938_vm1, %v899_v8  ;;  %v733_v17 = vadd.f32 %v2412_v15, %v732_v12 }
 0x2f7   :  { %v1310_v14 = vmax.f32 %v1150_v10, %v1246_v13  ;;  %v1484_v3 = vpop.xlane.xlu0 %1483  ;;  %v802_v21 = vmul.f32 0.01, %v733_v17 }
 0x2f8   :  { %v1624_v16 = vadd.f32 %v2394_v58, %v1484_v3 }
 0x2f9   :  { %v1378_v18 = vmul.f32 %v2557_v34, %v1310_v14  ;;  %v866_v47 = vmax.f32 %v733_v17, %v802_v21 }
 0x2fa   :  { %1689 = vst.msk [vmem:[%s2948_s9 + $0xd8] sm:$0xff] %vm1661_vm3, %v1624_v16  ;;  %v1151_v19 = vpop.f32.mrf.mxu2 }
 0x2fb   :  { %v1152_v50 = vadd.f32 %v2548_v4, %v1151_v19  ;;  %v1527_v9 = vsel %vm1400_vm2, %v1378_v18, 0.0 }
 0x2fc   :  { %v734_v20 = vpop.f32.mrf.mxu3  ;;  %1528 = vadd.xlane.f32.xlu0 %v1527_v9 }
 0x2fd   :  { %v1247_v22 = vmul.f32 0.01, %v1152_v50  ;;  %v735_v23 = vadd.f32 %v2412_v15, %v734_v20 }
 0x2ff   :  { %v1311_v24 = vmax.f32 %v1152_v50, %v1247_v22  ;;  %v803_v25 = vmul.f32 0.01, %v735_v23  ;;  %v1487_v26 = vpop.xlane.xlu1 %1486 }
 0x300   :  { %v1625_v27 = vadd.f32 %v2394_v58, %v1487_v26 }
 0x301   :  { %v867_v28 = vmax.f32 %v735_v23, %v803_v25  ;;  %v1379_v29 = vmul.f32 %v2557_v34, %v1311_v24 }
 0x302   :  { %1690 = vst.msk [vmem:[%s2948_s9 + $0xe0] sm:$0xff] %vm1661_vm3, %v1625_v27  ;;  %v1154_v30 = vpop.f32.mrf.mxu2 }
 0x303   :  { %v900_v37 = vpack.c.bf16 %v867_v28, %v866_v47  ;;  %v1155_v32 = vadd.f32 %v2548_v4, %v1154_v30  ;;  %v1530_v33 = vsel %vm1400_vm2, %v1379_v29, 0.0 }
 0x304   :  { %v737_v35 = vpop.f32.mrf.mxu3  ;;  %1531 = vadd.xlane.f32.xlu1 %v1530_v33 }
 0x305   :  { %v1248_v36 = vmul.f32 0.01, %v1155_v32  ;;  %1844 = vmatmul.msk.bf16.gmra.mxu3 %vm938_vm1, %v900_v37  ;;  %v738_v41 = vadd.f32 %v2412_v15, %v737_v35 }
 0x307   :  { %v1312_v38 = vmax.f32 %v1155_v32, %v1248_v36  ;;  %v1490_v39 = vpop.xlane.xlu2 %1489  ;;  %v804_v53 = vmul.f32 0.01, %v738_v41 }
 0x308   :  { %v1626_v40 = vadd.f32 %v2394_v58, %v1490_v39 }
 0x309   :  { %v1380_v43 = vmul.f32 %v2557_v34, %v1312_v38  ;;  %v868_v59 = vmax.f32 %v738_v41, %v804_v53 }
 0x30a   :  { %1691 = vst.msk [vmem:[%s2948_s9 + $0xe8] sm:$0xff] %vm1661_vm3, %v1626_v40  ;;  %v1156_v45 = vpop.f32.mrf.mxu2 }
 0x30b   :  { %v1157_v48 = vadd.f32 %v2548_v4, %v1156_v45  ;;  %v1533_v49 = vsel %vm1400_vm2, %v1380_v43, 0.0 }
 0x30c   :  { %v739_v52 = vpop.f32.mrf.mxu3  ;;  %1534 = vadd.xlane.f32.xlu2 %v1533_v49 }
 0x30d   :  { %v1249_v54 = vmul.f32 0.01, %v1157_v48  ;;  %v740_v55 = vadd.f32 %v2412_v15, %v739_v52 }
 0x30f   :  { %v1313_v56 = vmax.f32 %v1157_v48, %v1249_v54  ;;  %v805_v57 = vmul.f32 0.01, %v740_v55  ;;  %v1493_v31 = vpop.xlane.xlu0 %1492 }
 0x310   :  { %v1627_v51 = vadd.f32 %v2394_v58, %v1493_v31 }
 0x311   :  { %v869_v60 = vmax.f32 %v740_v55, %v805_v57  ;;  %v1381_v61 = vmul.f32 %v2557_v34, %v1313_v56 }
 0x312   :  { %1692 = vst.msk [vmem:[%s2948_s9 + $0xf0] sm:$0xff] %vm1661_vm3, %v1627_v51 }
 0x313   :  { %v901_v62 = vpack.c.bf16 %v869_v60, %v868_v59  ;;  %v1536_v63 = vsel %vm1400_vm2, %v1381_v61, 0.0 }
 0x314   :  { %1537 = vadd.xlane.f32.xlu0 %v1536_v63 }
 0x315   :  { %1845 = vmatmul.msk.bf16.gmra.mxu3 %vm938_vm1, %v901_v62 }
 0x317   :  { %v1496_v15 = vpop.xlane.xlu1 %1495 }
 0x318   :  { %v1628_v0 = vadd.f32 %v2394_v58, %v1496_v15  ;;  %v1159_v1 = vpop.f32.mrf.mxu2 }
 0x319   :  { %v1160_v2 = vadd.f32 %v2548_v4, %v1159_v1 }
 0x31a   :  { %1693 = vst.msk [vmem:[%s2948_s9 + $0xf8] sm:$0xff] %vm1661_vm3, %v1628_v0 }
 0x31b   :  { %v1250_v44 = vmul.f32 0.01, %v1160_v2 }
 0x31d   :  { %v1314_v42 = vmax.f32 %v1160_v2, %v1250_v44 }
 0x31f   :  { %v1499_v5 = vpop.xlane.xlu2 %1498  ;;  %v1382_v46 = vmul.f32 %v2557_v34, %v1314_v42 }
 0x320   :  { %v1629_v7 = vadd.f32 %v2725_v6, %v1499_v5  ;;  %v1161_v8 = vpop.f32.mrf.mxu2 }
 0x321   :  { %v1162_v58 = vadd.f32 %v2548_v4, %v1161_v8  ;;  %v1539_v10 = vsel %vm1400_vm2, %v1382_v46, 0.0 }
 0x322   :  { %1694 = vst.msk [vmem:[%s2948_s9 + $0x100] sm:$0xff] %vm1661_vm3, %v1629_v7  ;;  %1540 = vadd.xlane.f32.xlu1 %v1539_v10 }
 0x323   :  { %v1251_v11 = vmul.f32 0.01, %v1162_v58 }
 0x325   :  { %v1315_v12 = vmax.f32 %v1162_v58, %v1251_v11 }
 0x327   :  { %v1502_v13 = vpop.xlane.xlu0 %1501  ;;  %v1383_v14 = vmul.f32 %v2557_v34, %v1315_v12 }
 0x328   :  { %v1630_v3 = vadd.f32 %v2725_v6, %v1502_v13  ;;  %v1164_v16 = vpop.f32.mrf.mxu3 }
 0x329   :  { %v1165_v17 = vadd.f32 %v2548_v4, %v1164_v16  ;;  %v1542_v18 = vsel %vm1400_vm2, %v1383_v14, 0.0 }
 0x32a   :  { %1695 = vst.msk [vmem:[%s2948_s9 + $0x108] sm:$0xff] %vm1661_vm3, %v1630_v3  ;;  %1543 = vadd.xlane.f32.xlu2 %v1542_v18 }
 0x32b   :  { %v1252_v19 = vmul.f32 0.01, %v1165_v17 }
 0x32d   :  { %v1316_v50 = vmax.f32 %v1165_v17, %v1252_v19 }
 0x32f   :  { %v1505_v9 = vpop.xlane.xlu1 %1504  ;;  %v1384_v20 = vmul.f32 %v2557_v34, %v1316_v50 }
 0x330   :  { %v1631_v21 = vadd.f32 %v2725_v6, %v1505_v9  ;;  %v1166_v22 = vpop.f32.mrf.mxu3 }
 0x331   :  { %v1167_v23 = vadd.f32 %v2548_v4, %v1166_v22  ;;  %v1545_v24 = vsel %vm1400_vm2, %v1384_v20, 0.0 }
 0x332   :  { %1696 = vst.msk [vmem:[%s2948_s9 + $0x110] sm:$0xff] %vm1661_vm3, %v1631_v21  ;;  %1546 = vadd.xlane.f32.xlu0 %v1545_v24 }
 0x333   :  { %v1253_v25 = vmul.f32 0.01, %v1167_v23 }
 0x335   :  { %v1317_v26 = vmax.f32 %v1167_v23, %v1253_v25 }
 0x337   :  { %v1508_v27 = vpop.xlane.xlu2 %1507  ;;  %v1385_v47 = vmul.f32 %v2557_v34, %v1317_v26 }
 0x338   :  { %v1632_v28 = vadd.f32 %v2725_v6, %v1508_v27  ;;  %v1169_v29 = vpop.f32.mrf.mxu3 }
 0x339   :  { %v1170_v30 = vadd.f32 %v2548_v4, %v1169_v29  ;;  %v1548_v37 = vsel %vm1400_vm2, %v1385_v47, 0.0 }
 0x33a   :  { %1697 = vst.msk [vmem:[%s2948_s9 + $0x118] sm:$0xff] %vm1661_vm3, %v1632_v28  ;;  %1549 = vadd.xlane.f32.xlu1 %v1548_v37 }
 0x33b   :  { %v1254_v32 = vmul.f32 0.01, %v1170_v30 }
 0x33d   :  { %v1318_v33 = vmax.f32 %v1170_v30, %v1254_v32 }
 0x33f   :  { %v1511_v35 = vpop.xlane.xlu0 %1510  ;;  %v1386_v36 = vmul.f32 %v2557_v34, %v1318_v33 }
 0x340   :  { %v1633_v38 = vadd.f32 %v2725_v6, %v1511_v35  ;;  %v1171_v39 = vpop.f32.mrf.mxu3 }
 0x341   :  { %v1172_v40 = vadd.f32 %v2548_v4, %v1171_v39  ;;  %v1551_v41 = vsel %vm1400_vm2, %v1386_v36, 0.0 }
 0x342   :  { %1698 = vst.msk [vmem:[%s2948_s9 + $0x120] sm:$0xff] %vm1661_vm3, %v1633_v38  ;;  %1552 = vadd.xlane.f32.xlu2 %v1551_v41 }
 0x343   :  { %v1255_v43 = vmul.f32 0.01, %v1172_v40 }
 0x345   :  { %v1319_v45 = vmax.f32 %v1172_v40, %v1255_v43 }
 0x347   :  { %v1514_v48 = vpop.xlane.xlu1 %1513  ;;  %v1387_v49 = vmul.f32 %v2557_v34, %v1319_v45 }
 0x348   :  { %v1634_v52 = vadd.f32 %v2725_v6, %v1514_v48  ;;  %v1174_v53 = vpop.f32.mrf.mxu3 }
 0x349   :  { %v1175_v54 = vadd.f32 %v2548_v4, %v1174_v53  ;;  %v1554_v55 = vsel %vm1400_vm2, %v1387_v49, 0.0 }
 0x34a   :  { %1699 = vst.msk [vmem:[%s2948_s9 + $0x128] sm:$0xff] %vm1661_vm3, %v1634_v52  ;;  %1555 = vadd.xlane.f32.xlu0 %v1554_v55 }
 0x34b   :  { %v1256_v56 = vmul.f32 0.01, %v1175_v54 }
 0x34d   :  { %v1320_v57 = vmax.f32 %v1175_v54, %v1256_v56 }
 0x34f   :  { %v1517_v31 = vpop.xlane.xlu2 %1516  ;;  %v1388_v51 = vmul.f32 %v2557_v34, %v1320_v57 }
 0x350   :  { %v1635_v59 = vadd.f32 %v2725_v6, %v1517_v31  ;;  %v1176_v60 = vpop.f32.mrf.mxu3 }
 0x351   :  { %v1177_v61 = vadd.f32 %v2548_v4, %v1176_v60  ;;  %v1557_v62 = vsel %vm1400_vm2, %v1388_v51, 0.0 }
 0x352   :  { %1700 = vst.msk [vmem:[%s2948_s9 + $0x130] sm:$0xff] %vm1661_vm3, %v1635_v59  ;;  %1558 = vadd.xlane.f32.xlu1 %v1557_v62 }
 0x353   :  { %v1257_v63 = vmul.f32 0.01, %v1177_v61 }
 0x355   :  { %v1321_v15 = vmax.f32 %v1177_v61, %v1257_v63 }
 0x357   :  { %v1520_v0 = vpop.xlane.xlu0 %1519  ;;  %v1389_v1 = vmul.f32 %v2557_v34, %v1321_v15 }
 0x358   :  { %v1636_v2 = vadd.f32 %v2725_v6, %v1520_v0  ;;  %v1179_v44 = vpop.f32.mrf.mxu3 }
 0x359   :  { %v1180_v42 = vadd.f32 %v2548_v4, %v1179_v44  ;;  %v1560_v5 = vsel %vm1400_vm2, %v1389_v1, 0.0 }
 0x35a   :  { %1701 = vst.msk [vmem:[%s2948_s9 + $0x138] sm:$0xff] %vm1661_vm3, %v1636_v2  ;;  %1561 = vadd.xlane.f32.xlu2 %v1560_v5 }
 0x35b   :  { %v1258_v46 = vmul.f32 0.01, %v1180_v42 }
 0x35d   :  { %v1322_v7 = vmax.f32 %v1180_v42, %v1258_v46 }
 0x35f   :  { %v1523_v8 = vpop.xlane.xlu1 %1522  ;;  %v1390_v58 = vmul.f32 %v2557_v34, %v1322_v7 }
 0x360   :  { %v1637_v10 = vadd.f32 %v2725_v6, %v1523_v8  ;;  %v1181_v11 = vpop.f32.mrf.mxu3 }
 0x361   :  { %v1182_v12 = vadd.f32 %v2548_v4, %v1181_v11  ;;  %v1563_v13 = vsel %vm1400_vm2, %v1390_v58, 0.0 }
 0x362   :  { %1702 = vst.msk [vmem:[%s2948_s9 + $0x140] sm:$0xff] %vm1661_vm3, %v1637_v10  ;;  %1564 = vadd.xlane.f32.xlu0 %v1563_v13 }
 0x363   :  { %v1259_v14 = vmul.f32 0.01, %v1182_v12 }
 0x365   :  { %v1323_v3 = vmax.f32 %v1182_v12, %v1259_v14 }
 0x367   :  { %v1526_v16 = vpop.xlane.xlu2 %1525  ;;  %v1391_v17 = vmul.f32 %v2557_v34, %v1323_v3 }
 0x368   :  { %v1638_v18 = vadd.f32 %v2725_v6, %v1526_v16  ;;  %v1184_v19 = vpop.f32.mrf.mxu3 }
 0x369   :  { %v1185_v50 = vadd.f32 %v2548_v4, %v1184_v19  ;;  %v1566_v9 = vsel %vm1400_vm2, %v1391_v17, 0.0 }
 0x36a   :  { %1703 = vst.msk [vmem:[%s2948_s9 + $0x148] sm:$0xff] %vm1661_vm3, %v1638_v18  ;;  %1567 = vadd.xlane.f32.xlu1 %v1566_v9 }
 0x36b   :  { %v1260_v20 = vmul.f32 0.01, %v1185_v50 }
 0x36d   :  { %v1324_v21 = vmax.f32 %v1185_v50, %v1260_v20 }
 0x36f   :  { %v1529_v22 = vpop.xlane.xlu0 %1528  ;;  %v1392_v23 = vmul.f32 %v2557_v34, %v1324_v21 }
 0x370   :  { %v1639_v24 = vadd.f32 %v2725_v6, %v1529_v22  ;;  %v1186_v25 = vpop.f32.mrf.mxu3 }
 0x371   :  { %v1187_v26 = vadd.f32 %v2548_v4, %v1186_v25  ;;  %v1569_v27 = vsel %vm1400_vm2, %v1392_v23, 0.0 }
 0x372   :  { %1704 = vst.msk [vmem:[%s2948_s9 + $0x150] sm:$0xff] %vm1661_vm3, %v1639_v24  ;;  %1570 = vadd.xlane.f32.xlu2 %v1569_v27 }
 0x373   :  { %v1261_v47 = vmul.f32 0.01, %v1187_v26 }
 0x375   :  { %v1325_v28 = vmax.f32 %v1187_v26, %v1261_v47 }
 0x377   :  { %v1532_v29 = vpop.xlane.xlu1 %1531  ;;  %v1393_v30 = vmul.f32 %v2557_v34, %v1325_v28 }
 0x378   :  { %v1640_v37 = vadd.f32 %v2725_v6, %v1532_v29  ;;  %v1189_v32 = vpop.f32.mrf.mxu3 }
 0x379   :  { %v1190_v33 = vadd.f32 %v2548_v4, %v1189_v32  ;;  %v1572_v35 = vsel %vm1400_vm2, %v1393_v30, 0.0 }
 0x37a   :  { %1705 = vst.msk [vmem:[%s2948_s9 + $0x158] sm:$0xff] %vm1661_vm3, %v1640_v37  ;;  %1573 = vadd.xlane.f32.xlu0 %v1572_v35 }
 0x37b   :  { %v1262_v36 = vmul.f32 0.01, %v1190_v33 }
 0x37d   :  { %v1326_v38 = vmax.f32 %v1190_v33, %v1262_v36 }
 0x37f   :  { %v1535_v39 = vpop.xlane.xlu2 %1534  ;;  %v1394_v40 = vmul.f32 %v2557_v34, %v1326_v38 }
 0x380   :  { %v1641_v41 = vadd.f32 %v2725_v6, %v1535_v39  ;;  %v1191_v43 = vpop.f32.mrf.mxu3 }
 0x381   :  { %v1192_v45 = vadd.f32 %v2548_v4, %v1191_v43  ;;  %v1575_v48 = vsel %vm1400_vm2, %v1394_v40, 0.0 }
 0x382   :  { %1706 = vst.msk [vmem:[%s2948_s9 + $0x160] sm:$0xff] %vm1661_vm3, %v1641_v41  ;;  %1576 = vadd.xlane.f32.xlu1 %v1575_v48 }
 0x383   :  { %v1263_v49 = vmul.f32 0.01, %v1192_v45 }
 0x385   :  { %v1327_v52 = vmax.f32 %v1192_v45, %v1263_v49 }
 0x387   :  { %v1538_v53 = vpop.xlane.xlu0 %1537  ;;  %v1395_v54 = vmul.f32 %v2557_v34, %v1327_v52 }
 0x388   :  { %v1642_v55 = vadd.f32 %v2725_v6, %v1538_v53  ;;  %v1194_v56 = vpop.f32.mrf.mxu3 }
 0x389   :  { %v1195_v57 = vadd.f32 %v2548_v4, %v1194_v56  ;;  %v1578_v31 = vsel %vm1400_vm2, %v1395_v54, 0.0 }
 0x38a   :  { %1707 = vst.msk [vmem:[%s2948_s9 + $0x168] sm:$0xff] %vm1661_vm3, %v1642_v55  ;;  %1579 = vadd.xlane.f32.xlu2 %v1578_v31 }
 0x38b   :  { %v1264_v51 = vmul.f32 0.01, %v1195_v57 }
 0x38d   :  { %v1328_v59 = vmax.f32 %v1195_v57, %v1264_v51 }
 0x38f   :  { %v1396_v60 = vmul.f32 %v2557_v34, %v1328_v59 }
 0x390   :  { %v1196_v61 = vpop.f32.mrf.mxu3 }
 0x391   :  { %v1197_v62 = vadd.f32 %v2548_v4, %v1196_v61  ;;  %v1581_v63 = vsel %vm1400_vm2, %v1396_v60, 0.0 }
 0x392   :  { %1582 = vadd.xlane.f32.xlu0 %v1581_v63 }
 0x393   :  { %v1265_v15 = vmul.f32 0.01, %v1197_v62 }
 0x395   :  { %v1329_v0 = vmax.f32 %v1197_v62, %v1265_v15  ;;  %v1541_v1 = vpop.xlane.xlu1 %1540 }
 0x396   :  { %v1643_v2 = vadd.f32 %v2725_v6, %v1541_v1 }
 0x397   :  { %v1397_v44 = vmul.f32 %v2557_v34, %v1329_v0 }
 0x398   :  { %1708 = vst.msk [vmem:[%s2948_s9 + $0x170] sm:$0xff] %vm1661_vm3, %v1643_v2  ;;  %v1199_v42 = vpop.f32.mrf.mxu3 }
 0x399   :  { %v1200_v5 = vadd.f32 %v2548_v4, %v1199_v42  ;;  %v1584_v46 = vsel %vm1400_vm2, %v1397_v44, 0.0 }
 0x39a   :  { %1585 = vadd.xlane.f32.xlu1 %v1584_v46 }
 0x39b   :  { %v1266_v7 = vmul.f32 0.01, %v1200_v5 }
 0x39d   :  { %v1330_v8 = vmax.f32 %v1200_v5, %v1266_v7  ;;  %v1544_v58 = vpop.xlane.xlu2 %1543 }
 0x39e   :  { %v1644_v10 = vadd.f32 %v2725_v6, %v1544_v58 }
 0x39f   :  { %v1398_v11 = vmul.f32 %v2557_v34, %v1330_v8 }
 0x3a0   :  { %1709 = vst.msk [vmem:[%s2948_s9 + $0x178] sm:$0xff] %vm1661_vm3, %v1644_v10  ;;  %v1201_v12 = vpop.f32.mrf.mxu3 }
 0x3a1   :  { %v1202_v13 = vadd.f32 %v2548_v4, %v1201_v12  ;;  %v1587_v14 = vsel %vm1400_vm2, %v1398_v11, 0.0 }
 0x3a2   :  { %1588 = vadd.xlane.f32.xlu2 %v1587_v14 }
 0x3a3   :  { %v1267_v3 = vmul.f32 0.01, %v1202_v13 }
 0x3a5   :  { %v1331_v16 = vmax.f32 %v1202_v13, %v1267_v3  ;;  %v1547_v17 = vpop.xlane.xlu0 %1546 }
 0x3a6   :  { %v1645_v18 = vadd.f32 %v2725_v6, %v1547_v17 }
 0x3a7   :  { %v1399_v19 = vmul.f32 %v2557_v34, %v1331_v16 }
 0x3a8   :  { %1710 = vst.msk [vmem:[%s2948_s9 + $0x180] sm:$0xff] %vm1661_vm3, %v1645_v18 }
 0x3a9   :  { %v1590_v50 = vsel %vm1400_vm2, %v1399_v19, 0.0 }
 0x3aa   :  { %1591 = vadd.xlane.f32.xlu0 %v1590_v50 }
 0x3ad   :  { %v1550_v9 = vpop.xlane.xlu1 %1549 }
 0x3ae   :  { %v1646_v4 = vadd.f32 %v2725_v6, %v1550_v9 }
 0x3b0   :  { %1711 = vst.msk [vmem:[%s2948_s9 + $0x188] sm:$0xff] %vm1661_vm3, %v1646_v4 }
 0x3b5   :  { %v1553_v20 = vpop.xlane.xlu2 %1552 }
 0x3b6   :  { %v1647_v21 = vadd.f32 %v2725_v6, %v1553_v20 }
 0x3b8   :  { %1712 = vst.msk [vmem:[%s2948_s9 + $0x190] sm:$0xff] %vm1661_vm3, %v1647_v21 }
 0x3bd   :  { %v1556_v34 = vpop.xlane.xlu0 %1555 }
 0x3be   :  { %v1648_v22 = vadd.f32 %v2725_v6, %v1556_v34 }
 0x3c0   :  { %1713 = vst.msk [vmem:[%s2948_s9 + $0x198] sm:$0xff] %vm1661_vm3, %v1648_v22 }
 0x3c5   :  { %v1559_v23 = vpop.xlane.xlu1 %1558 }
 0x3c6   :  { %v1649_v24 = vadd.f32 %v2725_v6, %v1559_v23 }
 0x3c8   :  { %1714 = vst.msk [vmem:[%s2948_s9 + $0x1a0] sm:$0xff] %vm1661_vm3, %v1649_v24 }
 0x3cd   :  { %v1562_v25 = vpop.xlane.xlu2 %1561 }
 0x3ce   :  { %v1650_v26 = vadd.f32 %v2725_v6, %v1562_v25 }
 0x3d0   :  { %1715 = vst.msk [vmem:[%s2948_s9 + $0x1a8] sm:$0xff] %vm1661_vm3, %v1650_v26 }
 0x3d5   :  { %v1565_v27 = vpop.xlane.xlu0 %1564 }
 0x3d6   :  { %v1651_v47 = vadd.f32 %v2725_v6, %v1565_v27 }
 0x3d8   :  { %1716 = vst.msk [vmem:[%s2948_s9 + $0x1b0] sm:$0xff] %vm1661_vm3, %v1651_v47 }
 0x3dd   :  { %v1568_v28 = vpop.xlane.xlu1 %1567 }
 0x3de   :  { %v1652_v29 = vadd.f32 %v2725_v6, %v1568_v28 }
 0x3e0   :  { %1717 = vst.msk [vmem:[%s2948_s9 + $0x1b8] sm:$0xff] %vm1661_vm3, %v1652_v29 }
 0x3e5   :  { %v1571_v30 = vpop.xlane.xlu2 %1570 }
 0x3e6   :  { %v1653_v37 = vadd.f32 %v2725_v6, %v1571_v30 }
 0x3e8   :  { %1718 = vst.msk [vmem:[%s2948_s9 + $0x1c0] sm:$0xff] %vm1661_vm3, %v1653_v37 }
 0x3ed   :  { %v1574_v32 = vpop.xlane.xlu0 %1573 }
 0x3ee   :  { %v1654_v33 = vadd.f32 %v2725_v6, %v1574_v32 }
 0x3f0   :  { %1719 = vst.msk [vmem:[%s2948_s9 + $0x1c8] sm:$0xff] %vm1661_vm3, %v1654_v33 }
 0x3f5   :  { %v1577_v35 = vpop.xlane.xlu1 %1576 }
 0x3f6   :  { %v1655_v36 = vadd.f32 %v2725_v6, %v1577_v35 }
 0x3f8   :  { %1720 = vst.msk [vmem:[%s2948_s9 + $0x1d0] sm:$0xff] %vm1661_vm3, %v1655_v36 }
 0x3fd   :  { %v1580_v38 = vpop.xlane.xlu2 %1579 }
 0x3fe   :  { %v1656_v39 = vadd.f32 %v2725_v6, %v1580_v38 }
 0x400   :  { %1721 = vst.msk [vmem:[%s2948_s9 + $0x1d8] sm:$0xff] %vm1661_vm3, %v1656_v39 }
 0x405   :  { %v1583_v40 = vpop.xlane.xlu0 %1582 }
 0x406   :  { %v1657_v41 = vadd.f32 %v2725_v6, %v1583_v40 }
 0x408   :  { %1722 = vst.msk [vmem:[%s2948_s9 + $0x1e0] sm:$0xff] %vm1661_vm3, %v1657_v41 }
 0x40d   :  { %v1586_v43 = vpop.xlane.xlu1 %1585 }
 0x40e   :  { %v1658_v45 = vadd.f32 %v2725_v6, %v1586_v43 }
 0x410   :  { %1723 = vst.msk [vmem:[%s2948_s9 + $0x1e8] sm:$0xff] %vm1661_vm3, %v1658_v45 }
 0x415   :  { %v1589_v48 = vpop.xlane.xlu2 %1588 }
 0x416   :  { %v1659_v49 = vadd.f32 %v2725_v6, %v1589_v48 }
 0x418   :  { %1724 = vst.msk [vmem:[%s2948_s9 + $0x1f0] sm:$0xff] %vm1661_vm3, %v1659_v49 }
 0x41d   :  { %v1592_v52 = vpop.xlane.xlu0 %1591 }
 0x41e   :  { %v1660_v53 = vadd.f32 %v2725_v6, %v1592_v52 }
 0x420   :  { %1725 = vst.msk [vmem:[%s2948_s9 + $0x1f8] sm:$0xff] %vm1661_vm3, %v1660_v53 }

</bundles_post_ra>
